<compile_context>
chip_gen: v5e
topology: v5e:2x2
jax: 0.10.0
libtpu: 0.0.40
codegen_flags: <defaults>
</compile_context>

<pallas_src>
import jax
import jax.numpy as jnp
from jax.experimental import pallas as pl
from jax.experimental.pallas import tpu as pltpu


# ---------------------------------------------------------------------------
# Fused Pallas kernel: conv1+pool1+conv2+pool2+fc1+fc2 for a tile of B images.
# Row layout inside the tile is h-major / image-minor: row = h*B + b.
# ---------------------------------------------------------------------------
def _make_fused_kernel(B):
    def kernel(x_ref, bw1_ref, b1_ref, bw2_ref, b2_ref,
               v1_ref, fb1_ref, v2_ref, fb2_ref, o_ref, xpad_ref, p1_ref):
        f32, bf16 = jnp.float32, jnp.bfloat16
        zpad = jnp.zeros((B, 64), bf16)

        # ---- conv1 (3x3, pad=1): 3 accumulating banded MXU matmuls --------
        # Input lanes = ci*16 + wi.  W zero-pad is folded into bw1's bands;
        # H zero-pad is the first/last B rows of the scratch.
        xpad_ref[0:B] = zpad
        xpad_ref[17 * B:18 * B] = zpad
        xpad_ref[B:17 * B] = x_ref[...]

        acc = jnp.dot(xpad_ref[0:16 * B], bw1_ref[0], preferred_element_type=f32)
        for kh in (1, 2):
            acc = acc + jnp.dot(xpad_ref[kh * B:(kh + 16) * B], bw1_ref[kh],
                                preferred_element_type=f32)
        # NOTE: if regalloc spills this (16B,128) f32 accumulator, it spills to
        # VMEM, which is cheap; total footprint is <0.5 MiB.
        y1 = jnp.maximum(acc + b1_ref[...], 0.0).astype(bf16)       # (16B, 128)

        # ---- maxpool1 (2x2), all VPU: width pairs = the two 64-lane halves,
        # height pairs = adjacent B-row blocks.  Result goes into a scratch
        # whose first/last B rows are conv2's height zero-padding.
        y1 = jnp.maximum(y1[:, :64], y1[:, 64:])                    # (16B, 64)
        p1_ref[0:B] = zpad
        p1_ref[9 * B:10 * B] = zpad
        for r in range(8):
            p1_ref[(r + 1) * B:(r + 2) * B] = jnp.maximum(
                y1[2 * r * B:(2 * r + 1) * B],
                y1[(2 * r + 1) * B:(2 * r + 2) * B])

        # ---- conv2 (3x3, pad=1) --------------------------------------------
        acc2 = jnp.dot(p1_ref[0:8 * B], bw2_ref[0], preferred_element_type=f32)
        for kh in (1, 2):
            acc2 = acc2 + jnp.dot(p1_ref[kh * B:(kh + 8) * B], bw2_ref[kh],
                                  preferred_element_type=f32)
        y2 = jnp.maximum(acc2 + b2_ref[...], 0.0).astype(bf16)      # (8B, 128)

        # ---- maxpool2 (2x2) + fc1 (NCHW flatten == sum over the 4 pooled
        # height rows of per-row GEMMs) + fc2 --------------------------------
        y2 = jnp.maximum(y2[:, :64], y2[:, 64:])                    # (8B, 64)
        h = jnp.dot(jnp.maximum(y2[0:B], y2[B:2 * B]), v1_ref[0],
                    preferred_element_type=f32)
        for r in (1, 2, 3):
            p2_r = jnp.maximum(y2[2 * r * B:(2 * r + 1) * B],
                               y2[(2 * r + 1) * B:(2 * r + 2) * B])
            h = h + jnp.dot(p2_r, v1_ref[r], preferred_element_type=f32)
        h = jnp.maximum(h + fb1_ref[...], 0.0)                      # (B, 32)

        out = jnp.dot(h.astype(bf16), v2_ref[...], preferred_element_type=f32)
        o_ref[...] = (out + fb2_ref[...]).astype(o_ref.dtype)       # (B, 8)

    return kernel


# ---------------------------------------------------------------------------
# One-time host-side weight packing (PyTorch layout -> MXU-friendly operands)
# ---------------------------------------------------------------------------
def init_params(cin=4, h=16, w=16, c1=8, c2=16, hidden=32, emb=8):
    def p(key, shape, scale):
        return scale * jax.random.normal(key, shape, dtype=jnp.float32)

    keys = jax.random.split(jax.random.PRNGKey(42), 8)
    flat = c2 * (h // 4) * (w // 4)
    return {
        "conv1_w": p(keys[0], (c1, cin, 3, 3), 0.1),
        "conv1_b": p(keys[1], (c1,), 0.1),
        "conv2_w": p(keys[2], (c2, c1, 3, 3), 0.1),
        "conv2_b": p(keys[3], (c2,), 0.1),
        "fc1_w": p(keys[4], (hidden, flat), 0.05),   # PyTorch Linear: (out, in)
        "fc1_b": p(keys[5], (hidden,), 0.05),
        "fc2_w": p(keys[6], (emb, hidden), 0.05),
        "fc2_b": p(keys[7], (emb,), 0.05),
    }


def pack_params(p):
    """Repack weights once: bf16 banded conv matrices, bias rows, FC blocks."""
    f32, bf16 = jnp.float32, jnp.bfloat16

    kj = jnp.arange(3).reshape(3, 1, 1, 1)
    dw = jnp.arange(2).reshape(1, 1, 2, 1)

    # conv1 banded weights: rows ci*16 + wi (unpadded width -> W zero-pad is
    # folded into the band), cols dw*64 + c1*8 + wo, one matrix per kh.
    wi1 = jnp.arange(16).reshape(1, 16, 1, 1)
    wo1 = jnp.arange(8).reshape(1, 1, 1, 8)
    s1 = (wi1 == 2 * wo1 + dw - 1 + kj).astype(f32)                 # (3,16,2,8)
    bw1 = jnp.einsum("jpdu,ockj->kcpdou", s1, p["conv1_w"])
    bw1 = bw1.reshape(3, 4 * 16, 2 * 8 * 8).astype(bf16)            # (3,64,128)

    # conv2 banded weights: rows c1*8 + wi, cols dw*64 + c2*4 + wo.
    wi2 = jnp.arange(8).reshape(1, 8, 1, 1)
    wo2 = jnp.arange(4).reshape(1, 1, 1, 4)
    s2 = (wi2 == 2 * wo2 + dw - 1 + kj).astype(f32)                 # (3,8,2,4)
    bw2 = jnp.einsum("jpdu,ockj->kcpdou", s2, p["conv2_w"])
    bw2 = bw2.reshape(3, 8 * 8, 2 * 16 * 4).astype(bf16)            # (3,64,128)

    # Bias rows matching the conv output lane layouts (kept f32 for the acc).
    brow1 = jnp.tile(jnp.repeat(p["conv1_b"], 8), 2).reshape(1, 128).astype(f32)
    brow2 = jnp.tile(jnp.repeat(p["conv2_b"], 4), 2).reshape(1, 128).astype(f32)

    # fc1 regrouped per pooled height row (PyTorch NCHW flatten: f=c2*16+h*4+w).
    v1 = p["fc1_w"].reshape(32, 16, 4, 4).transpose(2, 1, 3, 0)     # (h,c2,w,out)
    v1 = v1.reshape(4, 64, 32).astype(bf16)
    v2 = p["fc2_w"].T.astype(bf16)                                  # (32, 8)
    fb1 = p["fc1_b"].reshape(1, 32).astype(f32)
    fb2 = p["fc2_b"].reshape(1, 8).astype(f32)

    return dict(bw1=bw1, brow1=brow1, bw2=bw2, brow2=brow2,
                v1=v1, fb1=fb1, v2=v2, fb2=fb2)


# ---------------------------------------------------------------------------
# TripletNet forward = embedding_net forward (single fused pallas_call)
# ---------------------------------------------------------------------------
def triplet_net_forward(packed, x1, block_b=16):
    # block_b = images per grid step.  16 -> conv M = 256 (fills v6e/v7x MXU,
    # two full 128-row passes on v5e) and keeps every in-kernel slice aligned
    # to the bf16 (16,128) native tile.  Small batches are zero-padded up.
    n = x1.shape[0]
    B = block_b
    g = -(-n // B)
    npad = g * B

    x = x1.astype(jnp.bfloat16)
    if npad != n:
        x = jnp.pad(x, ((0, npad - n), (0, 0), (0, 0), (0, 0)))
    # NCHW -> rows h*B + b (per block), lanes ci*16 + wi.  No spatial padding
    # here: W-pad is in the banded weights, H-pad is added inside the kernel.
    xp = x.transpose(0, 2, 1, 3).reshape(npad, 16, 64)
    xp = xp.reshape(g, B, 16, 64).transpose(0, 2, 1, 3).reshape(g * 16 * B, 64)

    flops = g * B * 2 * (3 * 16 * 64 * 128 + 3 * 8 * 64 * 128 + 4 * 64 * 32 + 32 * 8)
    weight_bytes = sum(int(v.size) * v.dtype.itemsize for v in packed.values())
    bytes_accessed = int(xp.size) * 2 + npad * 8 * 4 + weight_bytes

    out = pl.pallas_call(
        _make_fused_kernel(B),
        out_shape=jax.ShapeDtypeStruct((npad, 8), jnp.float32),
        grid=(g,),
        in_specs=[
            pl.BlockSpec((16 * B, 64), lambda i: (i, 0)),      # B-image batch tile
            pl.BlockSpec((3, 64, 128), lambda i: (0, 0, 0)),   # conv1 banded W
            pl.BlockSpec((1, 128), lambda i: (0, 0)),          # conv1 bias row
            pl.BlockSpec((3, 64, 128), lambda i: (0, 0, 0)),   # conv2 banded W
            pl.BlockSpec((1, 128), lambda i: (0, 0)),          # conv2 bias row
            pl.BlockSpec((4, 64, 32), lambda i: (0, 0, 0)),    # fc1 per-row weights
            pl.BlockSpec((1, 32), lambda i: (0, 0)),           # fc1 bias
            pl.BlockSpec((32, 8), lambda i: (0, 0)),           # fc2 weight
            pl.BlockSpec((1, 8), lambda i: (0, 0)),            # fc2 bias
        ],
        out_specs=pl.BlockSpec((B, 8), lambda i: (i, 0)),      # (B,8) per step
        scratch_shapes=[pltpu.VMEM((18 * B, 64), jnp.bfloat16),   # H-padded conv1 in
                        pltpu.VMEM((10 * B, 64), jnp.bfloat16)],  # H-padded conv2 in
        compiler_params=pltpu.CompilerParams(
            dimension_semantics=("parallel",)),   # v7x: shard batch tiles over TCs
        cost_estimate=pl.CostEstimate(flops=flops, transcendentals=0,
                                      bytes_accessed=bytes_accessed),
    )(xp, packed["bw1"], packed["brow1"], packed["bw2"], packed["brow2"],
      packed["v1"], packed["fb1"], packed["v2"], packed["fb2"])
    return out[:n]


# ---------------------------------------------------------------------------
# Pure-JAX reference (f32) for a numerical sanity check
# ---------------------------------------------------------------------------
def reference_forward(params, x):
    dn = ("NCHW", "OIHW", "NCHW")
    y = jax.lax.conv_general_dilated(x, params["conv1_w"], (1, 1), "SAME",
                                     dimension_numbers=dn)
    y = jax.nn.relu(y + params["conv1_b"][None, :, None, None])
    y = jax.lax.reduce_window(y, -jnp.inf, jax.lax.max,
                              (1, 1, 2, 2), (1, 1, 2, 2), "VALID")
    y = jax.lax.conv_general_dilated(y, params["conv2_w"], (1, 1), "SAME",
                                     dimension_numbers=dn)
    y = jax.nn.relu(y + params["conv2_b"][None, :, None, None])
    y = jax.lax.reduce_window(y, -jnp.inf, jax.lax.max,
                              (1, 1, 2, 2), (1, 1, 2, 2), "VALID")
    y = y.reshape(x.shape[0], -1)
    y = jax.nn.relu(y @ params["fc1_w"].T + params["fc1_b"])
    return y @ params["fc2_w"].T + params["fc2_b"]


if __name__ == "__main__":
    key = jax.random.PRNGKey(0)
    x1 = jax.random.normal(key, (2, 4, 16, 16), dtype=jnp.float32)

    params = init_params(cin=4, h=16, w=16)
    packed = pack_params(params)          # one-time packing, not per forward

    fwd = jax.jit(triplet_net_forward)
    out = jax.block_until_ready(fwd(packed, x1))

    assert out.shape == (2, 8), out.shape
    assert bool(jnp.all(jnp.isfinite(out)))

    ref = reference_forward(params, x1)   # tolerance absorbs bf16 matmul operands
    assert jnp.allclose(out, ref, rtol=2e-2, atol=2e-2), (out, ref)

    print("KERNEL_OK")
</pallas_src>

<mosaic_0001>
module attributes {stable_mosaic.version = 11 : i64} {
  func.func @kernel(%arg0: i32, %arg1: memref<256x64xbf16, #tpu.memory_space<vmem>>, %arg2: memref<3x64x128xbf16, #tpu.memory_space<vmem>>, %arg3: memref<1x128xf32, #tpu.memory_space<vmem>>, %arg4: memref<3x64x128xbf16, #tpu.memory_space<vmem>>, %arg5: memref<1x128xf32, #tpu.memory_space<vmem>>, %arg6: memref<4x64x32xbf16, #tpu.memory_space<vmem>>, %arg7: memref<1x32xf32, #tpu.memory_space<vmem>>, %arg8: memref<32x8xbf16, #tpu.memory_space<vmem>>, %arg9: memref<1x8xf32, #tpu.memory_space<vmem>>, %arg10: memref<16x8xf32, #tpu.memory_space<vmem>>, %arg11: memref<288x64xbf16, #tpu.memory_space<vmem>>, %arg12: memref<160x64xbf16, #tpu.memory_space<vmem>>) attributes {dimension_semantics = [#tpu.dimension_semantics<parallel>], iteration_bounds = array<i64: 1>, scalar_prefetch = 0 : i64, scratch_operands = 2 : i64, tpu.core_type = #tpu.core_type<tc>, window_params = [{transform_indices = @transform_0, window_bounds = array<i64: 256, 64>}, {pipeline_mode = #tpu.pipeline_mode<synchronous>, transform_indices = @transform_1, window_bounds = array<i64: 3, 64, 128>}, {pipeline_mode = #tpu.pipeline_mode<synchronous>, transform_indices = @transform_2, window_bounds = array<i64: 1, 128>}, {pipeline_mode = #tpu.pipeline_mode<synchronous>, transform_indices = @transform_3, window_bounds = array<i64: 3, 64, 128>}, {pipeline_mode = #tpu.pipeline_mode<synchronous>, transform_indices = @transform_4, window_bounds = array<i64: 1, 128>}, {pipeline_mode = #tpu.pipeline_mode<synchronous>, transform_indices = @transform_5, window_bounds = array<i64: 4, 64, 32>}, {pipeline_mode = #tpu.pipeline_mode<synchronous>, transform_indices = @transform_6, window_bounds = array<i64: 1, 32>}, {pipeline_mode = #tpu.pipeline_mode<synchronous>, transform_indices = @transform_7, window_bounds = array<i64: 32, 8>}, {pipeline_mode = #tpu.pipeline_mode<synchronous>, transform_indices = @transform_8, window_bounds = array<i64: 1, 8>}, {transform_indices = @transform_9, window_bounds = array<i64: 16, 8>}]} {
    %cst = arith.constant 0.000000e+00 : bf16
    %0 = vector.broadcast %cst : bf16 to vector<16x64xbf16>
    %c0 = arith.constant 0 : index
    %c0_0 = arith.constant 0 : index
    %1 = vector.load %arg11[%c0, %c0_0] : memref<288x64xbf16, #tpu.memory_space<vmem>>, vector<16x64xbf16>
    tpu.vector_store %arg11[%c0, %c0_0], %0 {strides = array<i32>} : memref<288x64xbf16, #tpu.memory_space<vmem>>, vector<16x64xbf16>,
    %c272 = arith.constant 272 : index
    %c0_1 = arith.constant 0 : index
    %2 = vector.load %arg11[%c272, %c0_1] : memref<288x64xbf16, #tpu.memory_space<vmem>>, vector<16x64xbf16>
    tpu.vector_store %arg11[%c272, %c0_1], %0 {strides = array<i32>} : memref<288x64xbf16, #tpu.memory_space<vmem>>, vector<16x64xbf16>,
    %c0_2 = arith.constant 0 : index
    %c0_3 = arith.constant 0 : index
    %3 = vector.load %arg1[%c0_2, %c0_3] : memref<256x64xbf16, #tpu.memory_space<vmem>>, vector<256x64xbf16>
    %c16 = arith.constant 16 : index
    %c0_4 = arith.constant 0 : index
    %4 = vector.load %arg11[%c16, %c0_4] : memref<288x64xbf16, #tpu.memory_space<vmem>>, vector<256x64xbf16>
    tpu.vector_store %arg11[%c16, %c0_4], %3 {strides = array<i32>} : memref<288x64xbf16, #tpu.memory_space<vmem>>, vector<256x64xbf16>,
    %c0_5 = arith.constant 0 : index
    %c0_6 = arith.constant 0 : index
    %5 = vector.load %arg11[%c0_5, %c0_6] : memref<288x64xbf16, #tpu.memory_space<vmem>>, vector<256x64xbf16>
    %c0_7 = arith.constant 0 : index
    %c0_8 = arith.constant 0 : index
    %c0_9 = arith.constant 0 : index
    %6 = vector.load %arg2[%c0_7, %c0_8, %c0_9] : memref<3x64x128xbf16, #tpu.memory_space<vmem>>, vector<1x64x128xbf16>
    %7 = vector.shape_cast %6 : vector<1x64x128xbf16> to vector<64x128xbf16>
    %cst_10 = arith.constant dense<0.000000e+00> : vector<256x128xf32>
    %8 = tpu.matmul %5, %7, %cst_10 {dimension_numbers = #tpu.dot_dimension_numbers<[1], [0], [0], [1], [0, 0, 1, 1], [], []>} : vector<256x64xbf16>, vector<64x128xbf16>, vector<256x128xf32> -> vector<256x128xf32>
    %c16_11 = arith.constant 16 : index
    %c0_12 = arith.constant 0 : index
    %9 = vector.load %arg11[%c16_11, %c0_12] : memref<288x64xbf16, #tpu.memory_space<vmem>>, vector<256x64xbf16>
    %c1 = arith.constant 1 : index
    %c0_13 = arith.constant 0 : index
    %c0_14 = arith.constant 0 : index
    %10 = vector.load %arg2[%c1, %c0_13, %c0_14] : memref<3x64x128xbf16, #tpu.memory_space<vmem>>, vector<1x64x128xbf16>
    %11 = vector.shape_cast %10 : vector<1x64x128xbf16> to vector<64x128xbf16>
    %cst_15 = arith.constant dense<0.000000e+00> : vector<256x128xf32>
    %12 = tpu.matmul %9, %11, %cst_15 {dimension_numbers = #tpu.dot_dimension_numbers<[1], [0], [0], [1], [0, 0, 1, 1], [], []>} : vector<256x64xbf16>, vector<64x128xbf16>, vector<256x128xf32> -> vector<256x128xf32>
    %13 = arith.addf %8, %12 : vector<256x128xf32>
    %c32 = arith.constant 32 : index
    %c0_16 = arith.constant 0 : index
    %14 = vector.load %arg11[%c32, %c0_16] : memref<288x64xbf16, #tpu.memory_space<vmem>>, vector<256x64xbf16>
    %c2 = arith.constant 2 : index
    %c0_17 = arith.constant 0 : index
    %c0_18 = arith.constant 0 : index
    %15 = vector.load %arg2[%c2, %c0_17, %c0_18] : memref<3x64x128xbf16, #tpu.memory_space<vmem>>, vector<1x64x128xbf16>
    %16 = vector.shape_cast %15 : vector<1x64x128xbf16> to vector<64x128xbf16>
    %cst_19 = arith.constant dense<0.000000e+00> : vector<256x128xf32>
    %17 = tpu.matmul %14, %16, %cst_19 {dimension_numbers = #tpu.dot_dimension_numbers<[1], [0], [0], [1], [0, 0, 1, 1], [], []>} : vector<256x64xbf16>, vector<64x128xbf16>, vector<256x128xf32> -> vector<256x128xf32>
    %18 = arith.addf %13, %17 : vector<256x128xf32>
    %c0_20 = arith.constant 0 : index
    %c0_21 = arith.constant 0 : index
    %19 = vector.load %arg3[%c0_20, %c0_21] : memref<1x128xf32, #tpu.memory_space<vmem>>, vector<1x128xf32>
    %20 = vector.broadcast %19 : vector<1x128xf32> to vector<256x128xf32>
    %21 = arith.addf %18, %20 : vector<256x128xf32>
    %cst_22 = arith.constant 0.000000e+00 : f32
    %22 = vector.broadcast %cst_22 : f32 to vector<256x128xf32>
    %23 = arith.maximumf %21, %22 : vector<256x128xf32>
    %24 = arith.truncf %23 : vector<256x128xf32> to vector<256x128xbf16>
    %25 = vector.extract_strided_slice %24 {offsets = [0, 0], sizes = [256, 64], strides = [1, 1]} : vector<256x128xbf16> to vector<256x64xbf16>
    %26 = vector.extract_strided_slice %24 {offsets = [0, 64], sizes = [256, 64], strides = [1, 1]} : vector<256x128xbf16> to vector<256x64xbf16>
    %27 = arith.maximumf %25, %26 : vector<256x64xbf16>
    %c0_23 = arith.constant 0 : index
    %c0_24 = arith.constant 0 : index
    %28 = vector.load %arg12[%c0_23, %c0_24] : memref<160x64xbf16, #tpu.memory_space<vmem>>, vector<16x64xbf16>
    tpu.vector_store %arg12[%c0_23, %c0_24], %0 {strides = array<i32>} : memref<160x64xbf16, #tpu.memory_space<vmem>>, vector<16x64xbf16>,
    %c144 = arith.constant 144 : index
    %c0_25 = arith.constant 0 : index
    %29 = vector.load %arg12[%c144, %c0_25] : memref<160x64xbf16, #tpu.memory_space<vmem>>, vector<16x64xbf16>
    tpu.vector_store %arg12[%c144, %c0_25], %0 {strides = array<i32>} : memref<160x64xbf16, #tpu.memory_space<vmem>>, vector<16x64xbf16>,
    %30 = vector.extract_strided_slice %27 {offsets = [0, 0], sizes = [16, 64], strides = [1, 1]} : vector<256x64xbf16> to vector<16x64xbf16>
    %31 = vector.extract_strided_slice %27 {offsets = [16, 0], sizes = [16, 64], strides = [1, 1]} : vector<256x64xbf16> to vector<16x64xbf16>
    %32 = arith.maximumf %30, %31 : vector<16x64xbf16>
    %c16_26 = arith.constant 16 : index
    %c0_27 = arith.constant 0 : index
    %33 = vector.load %arg12[%c16_26, %c0_27] : memref<160x64xbf16, #tpu.memory_space<vmem>>, vector<16x64xbf16>
    tpu.vector_store %arg12[%c16_26, %c0_27], %32 {strides = array<i32>} : memref<160x64xbf16, #tpu.memory_space<vmem>>, vector<16x64xbf16>,
    %34 = vector.extract_strided_slice %27 {offsets = [32, 0], sizes = [16, 64], strides = [1, 1]} : vector<256x64xbf16> to vector<16x64xbf16>
    %35 = vector.extract_strided_slice %27 {offsets = [48, 0], sizes = [16, 64], strides = [1, 1]} : vector<256x64xbf16> to vector<16x64xbf16>
    %36 = arith.maximumf %34, %35 : vector<16x64xbf16>
    %c32_28 = arith.constant 32 : index
    %c0_29 = arith.constant 0 : index
    %37 = vector.load %arg12[%c32_28, %c0_29] : memref<160x64xbf16, #tpu.memory_space<vmem>>, vector<16x64xbf16>
    tpu.vector_store %arg12[%c32_28, %c0_29], %36 {strides = array<i32>} : memref<160x64xbf16, #tpu.memory_space<vmem>>, vector<16x64xbf16>,
    %38 = vector.extract_strided_slice %27 {offsets = [64, 0], sizes = [16, 64], strides = [1, 1]} : vector<256x64xbf16> to vector<16x64xbf16>
    %39 = vector.extract_strided_slice %27 {offsets = [80, 0], sizes = [16, 64], strides = [1, 1]} : vector<256x64xbf16> to vector<16x64xbf16>
    %40 = arith.maximumf %38, %39 : vector<16x64xbf16>
    %c48 = arith.constant 48 : index
    %c0_30 = arith.constant 0 : index
    %41 = vector.load %arg12[%c48, %c0_30] : memref<160x64xbf16, #tpu.memory_space<vmem>>, vector<16x64xbf16>
    tpu.vector_store %arg12[%c48, %c0_30], %40 {strides = array<i32>} : memref<160x64xbf16, #tpu.memory_space<vmem>>, vector<16x64xbf16>,
    %42 = vector.extract_strided_slice %27 {offsets = [96, 0], sizes = [16, 64], strides = [1, 1]} : vector<256x64xbf16> to vector<16x64xbf16>
    %43 = vector.extract_strided_slice %27 {offsets = [112, 0], sizes = [16, 64], strides = [1, 1]} : vector<256x64xbf16> to vector<16x64xbf16>
    %44 = arith.maximumf %42, %43 : vector<16x64xbf16>
    %c64 = arith.constant 64 : index
    %c0_31 = arith.constant 0 : index
    %45 = vector.load %arg12[%c64, %c0_31] : memref<160x64xbf16, #tpu.memory_space<vmem>>, vector<16x64xbf16>
    tpu.vector_store %arg12[%c64, %c0_31], %44 {strides = array<i32>} : memref<160x64xbf16, #tpu.memory_space<vmem>>, vector<16x64xbf16>,
    %46 = vector.extract_strided_slice %27 {offsets = [128, 0], sizes = [16, 64], strides = [1, 1]} : vector<256x64xbf16> to vector<16x64xbf16>
    %47 = vector.extract_strided_slice %27 {offsets = [144, 0], sizes = [16, 64], strides = [1, 1]} : vector<256x64xbf16> to vector<16x64xbf16>
    %48 = arith.maximumf %46, %47 : vector<16x64xbf16>
    %c80 = arith.constant 80 : index
    %c0_32 = arith.constant 0 : index
    %49 = vector.load %arg12[%c80, %c0_32] : memref<160x64xbf16, #tpu.memory_space<vmem>>, vector<16x64xbf16>
    tpu.vector_store %arg12[%c80, %c0_32], %48 {strides = array<i32>} : memref<160x64xbf16, #tpu.memory_space<vmem>>, vector<16x64xbf16>,
    %50 = vector.extract_strided_slice %27 {offsets = [160, 0], sizes = [16, 64], strides = [1, 1]} : vector<256x64xbf16> to vector<16x64xbf16>
    %51 = vector.extract_strided_slice %27 {offsets = [176, 0], sizes = [16, 64], strides = [1, 1]} : vector<256x64xbf16> to vector<16x64xbf16>
    %52 = arith.maximumf %50, %51 : vector<16x64xbf16>
    %c96 = arith.constant 96 : index
    %c0_33 = arith.constant 0 : index
    %53 = vector.load %arg12[%c96, %c0_33] : memref<160x64xbf16, #tpu.memory_space<vmem>>, vector<16x64xbf16>
    tpu.vector_store %arg12[%c96, %c0_33], %52 {strides = array<i32>} : memref<160x64xbf16, #tpu.memory_space<vmem>>, vector<16x64xbf16>,
    %54 = vector.extract_strided_slice %27 {offsets = [192, 0], sizes = [16, 64], strides = [1, 1]} : vector<256x64xbf16> to vector<16x64xbf16>
    %55 = vector.extract_strided_slice %27 {offsets = [208, 0], sizes = [16, 64], strides = [1, 1]} : vector<256x64xbf16> to vector<16x64xbf16>
    %56 = arith.maximumf %54, %55 : vector<16x64xbf16>
    %c112 = arith.constant 112 : index
    %c0_34 = arith.constant 0 : index
    %57 = vector.load %arg12[%c112, %c0_34] : memref<160x64xbf16, #tpu.memory_space<vmem>>, vector<16x64xbf16>
    tpu.vector_store %arg12[%c112, %c0_34], %56 {strides = array<i32>} : memref<160x64xbf16, #tpu.memory_space<vmem>>, vector<16x64xbf16>,
    %58 = vector.extract_strided_slice %27 {offsets = [224, 0], sizes = [16, 64], strides = [1, 1]} : vector<256x64xbf16> to vector<16x64xbf16>
    %59 = vector.extract_strided_slice %27 {offsets = [240, 0], sizes = [16, 64], strides = [1, 1]} : vector<256x64xbf16> to vector<16x64xbf16>
    %60 = arith.maximumf %58, %59 : vector<16x64xbf16>
    %c128 = arith.constant 128 : index
    %c0_35 = arith.constant 0 : index
    %61 = vector.load %arg12[%c128, %c0_35] : memref<160x64xbf16, #tpu.memory_space<vmem>>, vector<16x64xbf16>
    tpu.vector_store %arg12[%c128, %c0_35], %60 {strides = array<i32>} : memref<160x64xbf16, #tpu.memory_space<vmem>>, vector<16x64xbf16>,
    %c0_36 = arith.constant 0 : index
    %c0_37 = arith.constant 0 : index
    %62 = vector.load %arg12[%c0_36, %c0_37] : memref<160x64xbf16, #tpu.memory_space<vmem>>, vector<128x64xbf16>
    %c0_38 = arith.constant 0 : index
    %c0_39 = arith.constant 0 : index
    %c0_40 = arith.constant 0 : index
    %63 = vector.load %arg4[%c0_38, %c0_39, %c0_40] : memref<3x64x128xbf16, #tpu.memory_space<vmem>>, vector<1x64x128xbf16>
    %64 = vector.shape_cast %63 : vector<1x64x128xbf16> to vector<64x128xbf16>
    %cst_41 = arith.constant dense<0.000000e+00> : vector<128x128xf32>
    %65 = tpu.matmul %62, %64, %cst_41 {dimension_numbers = #tpu.dot_dimension_numbers<[1], [0], [0], [1], [0, 0, 1, 1], [], []>} : vector<128x64xbf16>, vector<64x128xbf16>, vector<128x128xf32> -> vector<128x128xf32>
    %c16_42 = arith.constant 16 : index
    %c0_43 = arith.constant 0 : index
    %66 = vector.load %arg12[%c16_42, %c0_43] : memref<160x64xbf16, #tpu.memory_space<vmem>>, vector<128x64xbf16>
    %c1_44 = arith.constant 1 : index
    %c0_45 = arith.constant 0 : index
    %c0_46 = arith.constant 0 : index
    %67 = vector.load %arg4[%c1_44, %c0_45, %c0_46] : memref<3x64x128xbf16, #tpu.memory_space<vmem>>, vector<1x64x128xbf16>
    %68 = vector.shape_cast %67 : vector<1x64x128xbf16> to vector<64x128xbf16>
    %cst_47 = arith.constant dense<0.000000e+00> : vector<128x128xf32>
    %69 = tpu.matmul %66, %68, %cst_47 {dimension_numbers = #tpu.dot_dimension_numbers<[1], [0], [0], [1], [0, 0, 1, 1], [], []>} : vector<128x64xbf16>, vector<64x128xbf16>, vector<128x128xf32> -> vector<128x128xf32>
    %70 = arith.addf %65, %69 : vector<128x128xf32>
    %c32_48 = arith.constant 32 : index
    %c0_49 = arith.constant 0 : index
    %71 = vector.load %arg12[%c32_48, %c0_49] : memref<160x64xbf16, #tpu.memory_space<vmem>>, vector<128x64xbf16>
    %c2_50 = arith.constant 2 : index
    %c0_51 = arith.constant 0 : index
    %c0_52 = arith.constant 0 : index
    %72 = vector.load %arg4[%c2_50, %c0_51, %c0_52] : memref<3x64x128xbf16, #tpu.memory_space<vmem>>, vector<1x64x128xbf16>
    %73 = vector.shape_cast %72 : vector<1x64x128xbf16> to vector<64x128xbf16>
    %cst_53 = arith.constant dense<0.000000e+00> : vector<128x128xf32>
    %74 = tpu.matmul %71, %73, %cst_53 {dimension_numbers = #tpu.dot_dimension_numbers<[1], [0], [0], [1], [0, 0, 1, 1], [], []>} : vector<128x64xbf16>, vector<64x128xbf16>, vector<128x128xf32> -> vector<128x128xf32>
    %75 = arith.addf %70, %74 : vector<128x128xf32>
    %c0_54 = arith.constant 0 : index
    %c0_55 = arith.constant 0 : index
    %76 = vector.load %arg5[%c0_54, %c0_55] : memref<1x128xf32, #tpu.memory_space<vmem>>, vector<1x128xf32>
    %77 = vector.broadcast %76 : vector<1x128xf32> to vector<128x128xf32>
    %78 = arith.addf %75, %77 : vector<128x128xf32>
    %cst_56 = arith.constant 0.000000e+00 : f32
    %79 = vector.broadcast %cst_56 : f32 to vector<128x128xf32>
    %80 = arith.maximumf %78, %79 : vector<128x128xf32>
    %81 = arith.truncf %80 : vector<128x128xf32> to vector<128x128xbf16>
    %82 = vector.extract_strided_slice %81 {offsets = [0, 0], sizes = [128, 64], strides = [1, 1]} : vector<128x128xbf16> to vector<128x64xbf16>
    %83 = vector.extract_strided_slice %81 {offsets = [0, 64], sizes = [128, 64], strides = [1, 1]} : vector<128x128xbf16> to vector<128x64xbf16>
    %84 = arith.maximumf %82, %83 : vector<128x64xbf16>
    %85 = vector.extract_strided_slice %84 {offsets = [0, 0], sizes = [16, 64], strides = [1, 1]} : vector<128x64xbf16> to vector<16x64xbf16>
    %86 = vector.extract_strided_slice %84 {offsets = [16, 0], sizes = [16, 64], strides = [1, 1]} : vector<128x64xbf16> to vector<16x64xbf16>
    %87 = arith.maximumf %85, %86 : vector<16x64xbf16>
    %c0_57 = arith.constant 0 : index
    %c0_58 = arith.constant 0 : index
    %c0_59 = arith.constant 0 : index
    %88 = vector.load %arg6[%c0_57, %c0_58, %c0_59] : memref<4x64x32xbf16, #tpu.memory_space<vmem>>, vector<1x64x32xbf16>
    %89 = vector.shape_cast %88 : vector<1x64x32xbf16> to vector<64x32xbf16>
    %cst_60 = arith.constant dense<0.000000e+00> : vector<16x32xf32>
    %90 = tpu.matmul %87, %89, %cst_60 {dimension_numbers = #tpu.dot_dimension_numbers<[1], [0], [0], [1], [0, 0, 1, 1], [], []>} : vector<16x64xbf16>, vector<64x32xbf16>, vector<16x32xf32> -> vector<16x32xf32>
    %91 = vector.extract_strided_slice %84 {offsets = [32, 0], sizes = [16, 64], strides = [1, 1]} : vector<128x64xbf16> to vector<16x64xbf16>
    %92 = vector.extract_strided_slice %84 {offsets = [48, 0], sizes = [16, 64], strides = [1, 1]} : vector<128x64xbf16> to vector<16x64xbf16>
    %93 = arith.maximumf %91, %92 : vector<16x64xbf16>
    %c1_61 = arith.constant 1 : index
    %c0_62 = arith.constant 0 : index
    %c0_63 = arith.constant 0 : index
    %94 = vector.load %arg6[%c1_61, %c0_62, %c0_63] : memref<4x64x32xbf16, #tpu.memory_space<vmem>>, vector<1x64x32xbf16>
    %95 = vector.shape_cast %94 : vector<1x64x32xbf16> to vector<64x32xbf16>
    %cst_64 = arith.constant dense<0.000000e+00> : vector<16x32xf32>
    %96 = tpu.matmul %93, %95, %cst_64 {dimension_numbers = #tpu.dot_dimension_numbers<[1], [0], [0], [1], [0, 0, 1, 1], [], []>} : vector<16x64xbf16>, vector<64x32xbf16>, vector<16x32xf32> -> vector<16x32xf32>
    %97 = arith.addf %90, %96 : vector<16x32xf32>
    %98 = vector.extract_strided_slice %84 {offsets = [64, 0], sizes = [16, 64], strides = [1, 1]} : vector<128x64xbf16> to vector<16x64xbf16>
    %99 = vector.extract_strided_slice %84 {offsets = [80, 0], sizes = [16, 64], strides = [1, 1]} : vector<128x64xbf16> to vector<16x64xbf16>
    %100 = arith.maximumf %98, %99 : vector<16x64xbf16>
    %c2_65 = arith.constant 2 : index
    %c0_66 = arith.constant 0 : index
    %c0_67 = arith.constant 0 : index
    %101 = vector.load %arg6[%c2_65, %c0_66, %c0_67] : memref<4x64x32xbf16, #tpu.memory_space<vmem>>, vector<1x64x32xbf16>
    %102 = vector.shape_cast %101 : vector<1x64x32xbf16> to vector<64x32xbf16>
    %cst_68 = arith.constant dense<0.000000e+00> : vector<16x32xf32>
    %103 = tpu.matmul %100, %102, %cst_68 {dimension_numbers = #tpu.dot_dimension_numbers<[1], [0], [0], [1], [0, 0, 1, 1], [], []>} : vector<16x64xbf16>, vector<64x32xbf16>, vector<16x32xf32> -> vector<16x32xf32>
    %104 = arith.addf %97, %103 : vector<16x32xf32>
    %105 = vector.extract_strided_slice %84 {offsets = [96, 0], sizes = [16, 64], strides = [1, 1]} : vector<128x64xbf16> to vector<16x64xbf16>
    %106 = vector.extract_strided_slice %84 {offsets = [112, 0], sizes = [16, 64], strides = [1, 1]} : vector<128x64xbf16> to vector<16x64xbf16>
    %107 = arith.maximumf %105, %106 : vector<16x64xbf16>
    %c3 = arith.constant 3 : index
    %c0_69 = arith.constant 0 : index
    %c0_70 = arith.constant 0 : index
    %108 = vector.load %arg6[%c3, %c0_69, %c0_70] : memref<4x64x32xbf16, #tpu.memory_space<vmem>>, vector<1x64x32xbf16>
    %109 = vector.shape_cast %108 : vector<1x64x32xbf16> to vector<64x32xbf16>
    %cst_71 = arith.constant dense<0.000000e+00> : vector<16x32xf32>
    %110 = tpu.matmul %107, %109, %cst_71 {dimension_numbers = #tpu.dot_dimension_numbers<[1], [0], [0], [1], [0, 0, 1, 1], [], []>} : vector<16x64xbf16>, vector<64x32xbf16>, vector<16x32xf32> -> vector<16x32xf32>
    %111 = arith.addf %104, %110 : vector<16x32xf32>
    %c0_72 = arith.constant 0 : index
    %c0_73 = arith.constant 0 : index
    %112 = vector.load %arg7[%c0_72, %c0_73] : memref<1x32xf32, #tpu.memory_space<vmem>>, vector<1x32xf32>
    %113 = vector.broadcast %112 : vector<1x32xf32> to vector<16x32xf32>
    %114 = arith.addf %111, %113 : vector<16x32xf32>
    %cst_74 = arith.constant 0.000000e+00 : f32
    %115 = vector.broadcast %cst_74 : f32 to vector<16x32xf32>
    %116 = arith.maximumf %114, %115 : vector<16x32xf32>
    %117 = arith.truncf %116 : vector<16x32xf32> to vector<16x32xbf16>
    %c0_75 = arith.constant 0 : index
    %c0_76 = arith.constant 0 : index
    %118 = vector.load %arg8[%c0_75, %c0_76] : memref<32x8xbf16, #tpu.memory_space<vmem>>, vector<32x8xbf16>
    %cst_77 = arith.constant dense<0.000000e+00> : vector<16x8xf32>
    %119 = tpu.matmul %117, %118, %cst_77 {dimension_numbers = #tpu.dot_dimension_numbers<[1], [0], [0], [1], [0, 0, 1, 1], [], []>} : vector<16x32xbf16>, vector<32x8xbf16>, vector<16x8xf32> -> vector<16x8xf32>
    %c0_78 = arith.constant 0 : index
    %c0_79 = arith.constant 0 : index
    %120 = vector.load %arg9[%c0_78, %c0_79] : memref<1x8xf32, #tpu.memory_space<vmem>>, vector<1x8xf32>
    %121 = vector.broadcast %120 : vector<1x8xf32> to vector<16x8xf32>
    %122 = arith.addf %119, %121 : vector<16x8xf32>
    %c0_80 = arith.constant 0 : index
    %c0_81 = arith.constant 0 : index
    %123 = vector.load %arg10[%c0_80, %c0_81] : memref<16x8xf32, #tpu.memory_space<vmem>>, vector<16x8xf32>
    tpu.vector_store %arg10[%c0_80, %c0_81], %122 {strides = array<i32>} : memref<16x8xf32, #tpu.memory_space<vmem>>, vector<16x8xf32>,
    return
  }
  func.func @transform_0(%arg0: i32) -> (i32, i32) {
    %c0_i32 = arith.constant 0 : i32
    %c0_i32_0 = arith.constant 0 : i32
    return %arg0, %c0_i32 : i32, i32
  }
  func.func @transform_1(%arg0: i32) -> (i32, i32, i32) {
    %c0_i32 = arith.constant 0 : i32
    %c0_i32_0 = arith.constant 0 : i32
    %c0_i32_1 = arith.constant 0 : i32
    %c0_i32_2 = arith.constant 0 : i32
    return %c0_i32, %c0_i32_0, %c0_i32_1 : i32, i32, i32
  }
  func.func @transform_2(%arg0: i32) -> (i32, i32) {
    %c0_i32 = arith.constant 0 : i32
    %c0_i32_0 = arith.constant 0 : i32
    %c0_i32_1 = arith.constant 0 : i32
    return %c0_i32, %c0_i32_0 : i32, i32
  }
  func.func @transform_3(%arg0: i32) -> (i32, i32, i32) {
    %c0_i32 = arith.constant 0 : i32
    %c0_i32_0 = arith.constant 0 : i32
    %c0_i32_1 = arith.constant 0 : i32
    %c0_i32_2 = arith.constant 0 : i32
    return %c0_i32, %c0_i32_0, %c0_i32_1 : i32, i32, i32
  }
  func.func @transform_4(%arg0: i32) -> (i32, i32) {
    %c0_i32 = arith.constant 0 : i32
    %c0_i32_0 = arith.constant 0 : i32
    %c0_i32_1 = arith.constant 0 : i32
    return %c0_i32, %c0_i32_0 : i32, i32
  }
  func.func @transform_5(%arg0: i32) -> (i32, i32, i32) {
    %c0_i32 = arith.constant 0 : i32
    %c0_i32_0 = arith.constant 0 : i32
    %c0_i32_1 = arith.constant 0 : i32
    %c0_i32_2 = arith.constant 0 : i32
    return %c0_i32, %c0_i32_0, %c0_i32_1 : i32, i32, i32
  }
  func.func @transform_6(%arg0: i32) -> (i32, i32) {
    %c0_i32 = arith.constant 0 : i32
    %c0_i32_0 = arith.constant 0 : i32
    %c0_i32_1 = arith.constant 0 : i32
    return %c0_i32, %c0_i32_0 : i32, i32
  }
  func.func @transform_7(%arg0: i32) -> (i32, i32) {
    %c0_i32 = arith.constant 0 : i32
    %c0_i32_0 = arith.constant 0 : i32
    %c0_i32_1 = arith.constant 0 : i32
    return %c0_i32, %c0_i32_0 : i32, i32
  }
  func.func @transform_8(%arg0: i32) -> (i32, i32) {
    %c0_i32 = arith.constant 0 : i32
    %c0_i32_0 = arith.constant 0 : i32
    %c0_i32_1 = arith.constant 0 : i32
    return %c0_i32, %c0_i32_0 : i32, i32
  }
  func.func @transform_9(%arg0: i32) -> (i32, i32) {
    %c0_i32 = arith.constant 0 : i32
    %c0_i32_0 = arith.constant 0 : i32
    return %arg0, %c0_i32 : i32, i32
  }
}

</mosaic_0001>

<bundles_post_ra>
// kernel: triplet_net_forward.1
= control target key start
LH: loop header
LB: loop body
LE: loop exit
PB: predicated region body
PF: predicated region fallthrough
CT: control target
= control target key end

     0   :  { %vm33_vm0 = vcmask 519168   ;;  %v2845_v2 = vmov 0   ;;  %vm257_vm1 = vcmask 523264   ;;  %s2846_s25 = smov 64   ;;  %vm2093_vm2 = vcmask 261120   ;;  %s3753_s1 = inlined_call_operand.vmem [shape: bf16[3,64,128], index: 1, kind: input, shape index: {}]   ;;  %s3754_s0 = inlined_call_operand.vmem [shape: bf16[256,64], index: 0, kind: input, shape index: {}]   ;;  %s3755_s2 = inlined_call_operand.vmem [shape: f32[1,128], index: 2, kind: input, shape index: {}]   ;;  %s3756_s3 = inlined_call_operand.vmem [shape: bf16[3,64,128], index: 3, kind: input, shape index: {}]   ;;  %s3757_s4 = inlined_call_operand.vmem [shape: f32[1,128], index: 4, kind: input, shape index: {}]   ;;  %s3758_s5 = inlined_call_operand.vmem [shape: bf16[4,64,32], index: 5, kind: input, shape index: {}]   ;;  %s3759_s6 = inlined_call_operand.vmem [shape: f32[1,32], index: 6, kind: input, shape index: {}]   ;;  %s3760_s8 = inlined_call_operand.vmem [shape: f32[1,8], index: 8, kind: input, shape index: {}]   ;;  %s3761_s7 = inlined_call_operand.vmem [shape: bf16[32,8], index: 7, kind: input, shape index: {}]   ;;  %s3762_s9 = inlined_call_operand.vmem [shape: f32[16,8], index: 9, kind: output, shape index: {}]  }
   0x1   :  { %v2643_v0 = vld [vmem:[%s3753_s1 + $0x38] sm:$0xff]  ;;  %34 = vst.msk [vmem:[#allocation2] sm:$0xf] %vm33_vm0, %v2845_v2  ;;  %v2642_v3 = vld [vmem:[%s3753_s1 + $0x30] sm:$0xff]  ;;  %v62_v5 = vld [vmem:[%s3754_s0 + $0x60] sm:$0xf] }
   0x2   :  { %v2663_v1 = vld [vmem:[%s3753_s1 + $0x58] sm:$0xff]  ;;  %35 = vst.msk [vmem:[#allocation2 + $0x4] sm:$0xf] %vm33_vm0, %v2845_v2  ;;  %2711 = vmatpush.bf16.msra.mxu1 %v2643_v0  ;;  %v2662_v4 = vld [vmem:[%s3753_s1 + $0x50] sm:$0xff]  ;;  %v63_v6 = vld [vmem:[%s3754_s0 + $0x64] sm:$0xf]  ;;  %310 = vmatpush.bf16.msra.mxu0 %v2643_v0 }
   0x3   :  { %713 = vmatpush.bf16.msra.mxu2 %v2663_v1  ;;  %94 = vst.msk [vmem:[#allocation2 + $0x68] sm:$0xf] %vm33_vm0, %v62_v5  ;;  %2712 = vmatpush.bf16.msra.mxu3 %v2643_v0  ;;  %v40_v7 = vld [vmem:[%s3754_s0 + $0x8] sm:$0xf]  ;;  %v41_v8 = vld [vmem:[%s3754_s0 + $0xc] sm:$0xf] }
   0x4   :  { %95 = vst.msk [vmem:[#allocation2 + $0x6c] sm:$0xf] %vm33_vm0, %v63_v6  ;;  %v38_v9 = vld [vmem:[%s3754_s0] sm:$0xf]  ;;  %v2641_v10 = vld [vmem:[%s3753_s1 + $0x28] sm:$0xff]  ;;  %v2638_v15 = vld [vmem:[%s3753_s1 + $0x18] sm:$0xff] }
   0x5   :  { %72 = vst.msk [vmem:[#allocation2 + $0x10] sm:$0xf] %vm33_vm0, %v40_v7  ;;  %v2661_v11 = vld [vmem:[%s3753_s1 + $0x48] sm:$0xff]  ;;  %v39_v12 = vld [vmem:[%s3754_s0 + $0x4] sm:$0xf]  ;;  %v2637_v21 = vld [vmem:[%s3753_s1 + $0x10] sm:$0xff] }
   0x6   :  { %2713 = vmatpush.bf16.msra.mxu1 %v2642_v3  ;;  %73 = vst.msk [vmem:[#allocation2 + $0x14] sm:$0xf] %vm33_vm0, %v41_v8  ;;  %311 = vmatpush.bf16.msra.mxu0 %v2642_v3  ;;  %v2640_v13 = vld [vmem:[%s3753_s1 + $0x20] sm:$0xff]  ;;  %v42_v16 = vld [vmem:[%s3754_s0 + $0x10] sm:$0xf]  ;;  %v2636_v24 = vld [vmem:[%s3753_s1 + $0x8] sm:$0xff] }
   0x7   :  { %714 = vmatpush.bf16.msra.mxu2 %v2662_v4  ;;  %70 = vst.msk [vmem:[#allocation2 + $0x8] sm:$0xf] %vm33_vm0, %v38_v9  ;;  %2714 = vmatpush.bf16.msra.mxu3 %v2642_v3  ;;  %v2660_v14 = vld [vmem:[%s3753_s1 + $0x40] sm:$0xff]  ;;  %v43_v19 = vld [vmem:[%s3754_s0 + $0x14] sm:$0xf]  ;;  %vm2111_vm3 = vcmask 64512  }
   0x8   :  { %71 = vst.msk [vmem:[#allocation2 + $0xc] sm:$0xf] %vm33_vm0, %v39_v12  ;;  %v44_v20 = vld [vmem:[%s3754_s0 + $0x18] sm:$0xf]  ;;  %v45_v23 = vld [vmem:[%s3754_s0 + $0x1c] sm:$0xf] }
   0x9   :  { %36 = vst.msk [vmem:[#allocation2 + $0x88] sm:$0xf] %vm33_vm0, %v2845_v2  ;;  %v2635_v25 = vld [vmem:[%s3753_s1] sm:$0xff]  ;;  %v48_v31 = vld [vmem:[%s3754_s0 + $0x28] sm:$0xf] }
   0xa   :  { %2715 = vmatpush.bf16.msra.mxu1 %v2641_v10  ;;  %37 = vst.msk [vmem:[#allocation2 + $0x8c] sm:$0xf] %vm33_vm0, %v2845_v2  ;;  %312 = vmatpush.bf16.msra.mxu0 %v2641_v10  ;;  %v46_v26 = vld [vmem:[%s3754_s0 + $0x20] sm:$0xf]  ;;  %v47_v27 = vld [vmem:[%s3754_s0 + $0x24] sm:$0xf] }
   0xb   :  { %715 = vmatpush.bf16.msra.mxu2 %v2661_v11  ;;  %1154 = vst.msk [vmem:[#allocation3] sm:$0xf] %vm33_vm0, %v2845_v2  ;;  %2716 = vmatpush.bf16.msra.mxu3 %v2641_v10  ;;  %v2957_v17 = vld [vmem:[#allocation2 + $0x68] sm:$0xff]  ;;  %v2619_v28 = vld [vmem:[#allocation2] sm:$0xff]  ;;  %v50_v35 = vld [vmem:[%s3754_s0 + $0x30] sm:$0xf] }
   0xc   :  { %1155 = vst.msk [vmem:[#allocation3 + $0x4] sm:$0xf] %vm33_vm0, %v2845_v2  ;;  %v49_v32 = vld [vmem:[%s3754_s0 + $0x2c] sm:$0xf]  ;;  %v51_v36 = vld [vmem:[%s3754_s0 + $0x34] sm:$0xf] }
   0xd   :  { %v2644_v18 = vld [vmem:[#allocation2 + $0x10] sm:$0xff]  ;;  %1156 = vst.msk [vmem:[#allocation3 + $0x48] sm:$0xf] %vm33_vm0, %v2845_v2  ;;  %v52_v39 = vld [vmem:[%s3754_s0 + $0x38] sm:$0xf] }
   0xe   :  { %2717 = vmatpush.bf16.msra.mxu1 %v2640_v13  ;;  %1157 = vst.msk [vmem:[#allocation3 + $0x4c] sm:$0xf] %vm33_vm0, %v2845_v2  ;;  %313 = vmatpush.bf16.msra.mxu0 %v2640_v13  ;;  %v2621_v30 = vld [vmem:[#allocation2 + $0x10] sm:$0xff]  ;;  %v53_v40 = vld [vmem:[%s3754_s0 + $0x3c] sm:$0xf] }
   0xf   :  { %716 = vmatpush.bf16.msra.mxu2 %v2660_v14  ;;  %v2620_v22 = vld [vmem:[#allocation2 + $0x8] sm:$0xff]  ;;  %74 = vst.msk [vmem:[#allocation2 + $0x18] sm:$0xf] %vm33_vm0, %v42_v16  ;;  %2718 = vmatpush.bf16.msra.mxu3 %v2640_v13  ;;  %v54_v43 = vld [vmem:[%s3754_s0 + $0x40] sm:$0xf] }
  0x10   :  { %75 = vst.msk [vmem:[#allocation2 + $0x1c] sm:$0xf] %vm33_vm0, %v43_v19  ;;  %v55_v44 = vld [vmem:[%s3754_s0 + $0x44] sm:$0xf]  ;;  %v56_v47 = vld [vmem:[%s3754_s0 + $0x48] sm:$0xf] }
  0x11   :  { %2218 = vmatmul.msk.bf16.vlgmr.msra.gmra.mxu1 %vm257_vm1, %v2957_v17  ;;  %76 = vst.msk [vmem:[#allocation2 + $0x20] sm:$0xf] %vm33_vm0, %v44_v20  ;;  %2206 = vmatmul.msk.bf16.vlgmr.msra.gmra.mxu0 %vm257_vm1, %v2620_v22  ;;  %v57_v48 = vld [vmem:[%s3754_s0 + $0x4c] sm:$0xf]  ;;  %v58_v51 = vld [vmem:[%s3754_s0 + $0x50] sm:$0xf] }
  0x12   :  { %431 = vmatpush.bf16.msrb.mxu1 %v2638_v15  ;;  %2346 = vmatmul.msk.bf16.vlgmr.msra.gmra.mxu2 %vm257_vm1, %v2644_v18  ;;  %77 = vst.msk [vmem:[#allocation2 + $0x24] sm:$0xf] %vm33_vm0, %v45_v23  ;;  %v59_v52 = vld [vmem:[%s3754_s0 + $0x54] sm:$0xf]  ;;  %v60_v55 = vld [vmem:[%s3754_s0 + $0x58] sm:$0xf] }
  0x13   :  { %78 = vst.msk [vmem:[#allocation2 + $0x28] sm:$0xf] %vm33_vm0, %v46_v26  ;;  %v61_v56 = vld [vmem:[%s3754_s0 + $0x5c] sm:$0xf]  ;;  %v3082_v7 = vld [vmem:[%s3755_s2] ss:$0 sm:$0xff] }
  0x14   :  { %79 = vst.msk [vmem:[#allocation2 + $0x2c] sm:$0xf] %vm33_vm0, %v47_v27  ;;  %v64_v16 = vld [vmem:[%s3754_s0 + $0x68] sm:$0xf]  ;;  %v65_v18 = vld [vmem:[%s3754_s0 + $0x6c] sm:$0xf] }
  0x15   :  { %80 = vst.msk [vmem:[#allocation2 + $0x30] sm:$0xf] %vm33_vm0, %v48_v31 }
  0x16   :  { %432 = vmatpush.bf16.msrb.mxu1 %v2637_v21  ;;  %81 = vst.msk [vmem:[#allocation2 + $0x34] sm:$0xf] %vm33_vm0, %v49_v32 }
  0x17   :  { %v2645_v29 = vld [vmem:[#allocation2 + $0x18] sm:$0xff]  ;;  %82 = vst.msk [vmem:[#allocation2 + $0x38] sm:$0xf] %vm33_vm0, %v50_v35 }
  0x18   :  { %v2622_v34 = vld [vmem:[#allocation2 + $0x18] sm:$0xff]  ;;  %83 = vst.msk [vmem:[#allocation2 + $0x3c] sm:$0xf] %vm33_vm0, %v51_v36  ;;  %v66_v36 = vld [vmem:[%s3754_s0 + $0x70] sm:$0xf] }
  0x19   :  { %v2646_v33 = vld [vmem:[#allocation2 + $0x20] sm:$0xff]  ;;  %84 = vst.msk [vmem:[#allocation2 + $0x40] sm:$0xf] %vm33_vm0, %v52_v39 }
  0x1a   :  { %433 = vmatpush.bf16.msrb.mxu1 %v2636_v24  ;;  %v2623_v38 = vld [vmem:[#allocation2 + $0x20] sm:$0xff]  ;;  %85 = vst.msk [vmem:[#allocation2 + $0x44] sm:$0xf] %vm33_vm0, %v53_v40  ;;  %v2655_v40 = vld [vmem:[#allocation2 + $0x68] sm:$0xff] }
  0x1b   :  { %v2647_v37 = vld [vmem:[#allocation2 + $0x28] sm:$0xff]  ;;  %86 = vst.msk [vmem:[#allocation2 + $0x48] sm:$0xf] %vm33_vm0, %v54_v43 }
  0x1c   :  { %v2624_v42 = vld [vmem:[#allocation2 + $0x28] sm:$0xff]  ;;  %87 = vst.msk [vmem:[#allocation2 + $0x4c] sm:$0xf] %vm33_vm0, %v55_v44 }
  0x1d   :  { %v2648_v41 = vld [vmem:[#allocation2 + $0x30] sm:$0xff]  ;;  %88 = vst.msk [vmem:[#allocation2 + $0x50] sm:$0xf] %vm33_vm0, %v56_v47 }
  0x1e   :  { %434 = vmatpush.bf16.msrb.mxu1 %v2635_v25  ;;  %v2625_v46 = vld [vmem:[#allocation2 + $0x30] sm:$0xff]  ;;  %89 = vst.msk [vmem:[#allocation2 + $0x54] sm:$0xf] %vm33_vm0, %v57_v48 }
  0x1f   :  { %v2649_v45 = vld [vmem:[#allocation2 + $0x38] sm:$0xff]  ;;  %90 = vst.msk [vmem:[#allocation2 + $0x58] sm:$0xf] %vm33_vm0, %v58_v51 }
  0x20   :  { %v2626_v50 = vld [vmem:[#allocation2 + $0x38] sm:$0xff]  ;;  %91 = vst.msk [vmem:[#allocation2 + $0x5c] sm:$0xf] %vm33_vm0, %v59_v52 }
  0x21   :  { %2242 = vmatmul.msk.bf16.vlgmr.msrb.gmra.mxu1 %vm257_vm1, %v2619_v28  ;;  %2207 = vmatmul.msk.bf16.gmra.mxu0 %vm257_vm1, %v2621_v30  ;;  %v2650_v49 = vld [vmem:[#allocation2 + $0x40] sm:$0xff]  ;;  %92 = vst.msk [vmem:[#allocation2 + $0x60] sm:$0xf] %vm33_vm0, %v60_v55 }
  0x22   :  { %2347 = vmatmul.msk.bf16.gmra.mxu2 %vm257_vm1, %v2645_v29  ;;  %v2627_v54 = vld [vmem:[#allocation2 + $0x40] sm:$0xff]  ;;  %93 = vst.msk [vmem:[#allocation2 + $0x64] sm:$0xf] %vm33_vm0, %v61_v56  ;;  %v68_v56 = vld [vmem:[%s3754_s0 + $0x78] sm:$0xf] }
  0x23   :  { %v2651_v53 = vld [vmem:[#allocation2 + $0x48] sm:$0xff]  ;;  %96 = vst.msk [vmem:[#allocation2 + $0x70] sm:$0xf] %vm33_vm0, %v64_v16 }
  0x24   :  { %v2628_v59 = vld [vmem:[#allocation2 + $0x48] sm:$0xff]  ;;  %97 = vst.msk [vmem:[#allocation2 + $0x74] sm:$0xf] %vm33_vm0, %v65_v18 }
  0x25   :  { %v2652_v57 = vld [vmem:[#allocation2 + $0x50] sm:$0xff]  ;;  %98 = vst.msk [vmem:[#allocation2 + $0x78] sm:$0xf] %vm33_vm0, %v66_v36 }
  0x26   :  { %v2629_v3 = vld [vmem:[#allocation2 + $0x50] sm:$0xff]  ;;  %100 = vst.msk [vmem:[#allocation2 + $0x80] sm:$0xf] %vm33_vm0, %v68_v56 }
  0x27   :  { %v2653_v1 = vld [vmem:[#allocation2 + $0x58] sm:$0xff] }
  0x28   :  { %v2630_v23 = vld [vmem:[#allocation2 + $0x58] sm:$0xff] }
  0x29   :  { %v2654_v20 = vld [vmem:[#allocation2 + $0x60] sm:$0xff] }
  0x31   :  { %2243 = vmatmul.msk.bf16.gmra.mxu1 %vm257_vm1, %v2620_v22  ;;  %2208 = vmatmul.msk.bf16.gmra.mxu0 %vm257_vm1, %v2622_v34 }
  0x32   :  { %2348 = vmatmul.msk.bf16.gmra.mxu2 %vm257_vm1, %v2646_v33 }
  0x41   :  { %2244 = vmatmul.msk.bf16.gmra.mxu1 %vm257_vm1, %v2621_v30  ;;  %2209 = vmatmul.msk.bf16.gmra.mxu0 %vm257_vm1, %v2623_v38 }
  0x42   :  { %2349 = vmatmul.msk.bf16.gmra.mxu2 %vm257_vm1, %v2647_v37  ;;  %v67_v37 = vld [vmem:[%s3754_s0 + $0x74] sm:$0xf] }
  0x43   :  { %99 = vst.msk [vmem:[#allocation2 + $0x7c] sm:$0xf] %vm33_vm0, %v67_v37 }
  0x51   :  { %2245 = vmatmul.msk.bf16.gmra.mxu1 %vm257_vm1, %v2622_v34  ;;  %2210 = vmatmul.msk.bf16.gmra.mxu0 %vm257_vm1, %v2624_v42 }
  0x52   :  { %2350 = vmatmul.msk.bf16.gmra.mxu2 %vm257_vm1, %v2648_v41 }
  0x61   :  { %2246 = vmatmul.msk.bf16.gmra.mxu1 %vm257_vm1, %v2623_v38  ;;  %2211 = vmatmul.msk.bf16.gmra.mxu0 %vm257_vm1, %v2625_v46 }
  0x62   :  { %2351 = vmatmul.msk.bf16.gmra.mxu2 %vm257_vm1, %v2649_v45 }
  0x71   :  { %2247 = vmatmul.msk.bf16.gmra.mxu1 %vm257_vm1, %v2624_v42  ;;  %2212 = vmatmul.msk.bf16.gmra.mxu0 %vm257_vm1, %v2626_v50  ;;  %v2631_v42 = vld [vmem:[#allocation2 + $0x60] sm:$0xff] }
  0x72   :  { %2352 = vmatmul.msk.bf16.gmra.mxu2 %vm257_vm1, %v2650_v49 }
  0x81   :  { %2248 = vmatmul.msk.bf16.gmra.mxu1 %vm257_vm1, %v2625_v46  ;;  %2213 = vmatmul.msk.bf16.gmra.mxu0 %vm257_vm1, %v2627_v54  ;;  %v3129_v46 = vld [vmem:[#allocation2 + $0x70] sm:$0xff] }
  0x82   :  { %2353 = vmatmul.msk.bf16.gmra.mxu2 %vm257_vm1, %v2651_v53  ;;  %2219 = vmatmul.msk.bf16.vlgmr.msra.gmra.mxu3 %vm257_vm1, %v3129_v46 }
  0x8e   :  { %v3072_v58 = vpop.f32.mrf.mxu1  ;;  %v315_v60 = vpop.f32.mrf.mxu0 }
  0x91   :  { %2249 = vmatmul.msk.bf16.gmra.mxu1 %vm257_vm1, %v2626_v50  ;;  %2214 = vmatmul.msk.bf16.gmra.mxu0 %vm257_vm1, %v2628_v59 }
  0x92   :  { %2354 = vmatmul.msk.bf16.gmra.mxu2 %vm257_vm1, %v2652_v57  ;;  %v69_v57 = vld [vmem:[%s3754_s0 + $0x7c] sm:$0xf] }
  0x93   :  { %101 = vst.msk [vmem:[#allocation2 + $0x84] sm:$0xf] %vm33_vm0, %v69_v57 }
  0x95   :  { %v718_v61 = vpop.f32.mrf.mxu2 }
  0x96   :  { %v3077_v62 = vpop.f32.mrf.mxu1  ;;  %v317_v63 = vpop.f32.mrf.mxu0 }
  0x9d   :  { %v720_v0 = vpop.f32.mrf.mxu2 }
  0x9e   :  { %v436_v2 = vpop.f32.mrf.mxu1  ;;  %v320_v5 = vpop.f32.mrf.mxu0 }
  0x9f   :  { %v437_v4 = vadd.f32 %v436_v2, %v315_v60  ;;  %v2656_v60 = vld [vmem:[#allocation2 + $0x70] sm:$0xff] }
  0xa1   :  { %v798_v6 = vadd.f32 %v718_v61, %v437_v4  ;;  %2250 = vmatmul.msk.bf16.gmra.mxu1 %vm257_vm1, %v2627_v54  ;;  %2215 = vmatmul.msk.bf16.gmra.mxu0 %vm257_vm1, %v2629_v3 }
  0xa2   :  { %2355 = vmatmul.msk.bf16.gmra.mxu2 %vm257_vm1, %v2653_v1 }
  0xa3   :  { %v3088_v9 = vadd.f32 %v3082_v7, %v798_v6 }
  0xa5   :  { %v723_v8 = vpop.f32.mrf.mxu2  ;;  %v866_v14 = vmax.f32 %v3088_v9, 0.0  ;;  %v2691_v9 = vld [vmem:[%s3756_s3 + $0x50] sm:$0xff] }
  0xa6   :  { %v438_v10 = vpop.f32.mrf.mxu1  ;;  %v322_v12 = vpop.f32.mrf.mxu0 }
  0xa7   :  { %v439_v11 = vadd.f32 %v438_v10, %v317_v63 }
  0xa9   :  { %v799_v13 = vadd.f32 %v720_v0, %v439_v11 }
  0xab   :  { %v3092_v15 = vadd.f32 %v3082_v7, %v799_v13 }
  0xad   :  { %v725_v19 = vpop.f32.mrf.mxu2  ;;  %v867_v21 = vmax.f32 %v3092_v15, 0.0 }
  0xae   :  { %v441_v22 = vpop.f32.mrf.mxu1  ;;  %v325_v25 = vpop.f32.mrf.mxu0 }
  0xaf   :  { %v442_v24 = vadd.f32 %v441_v22, %v320_v5  ;;  %v2721_v27 = vpack.i.bf16 %v867_v21, %v866_v14 }
  0xb1   :  { %v800_v26 = vadd.f32 %v723_v8, %v442_v24  ;;  %2251 = vmatmul.msk.bf16.gmra.mxu1 %vm257_vm1, %v2628_v59  ;;  %2216 = vmatmul.msk.bf16.gmra.mxu0 %vm257_vm1, %v2630_v23 }
  0xb2   :  { %2356 = vmatmul.msk.bf16.gmra.mxu2 %vm257_vm1, %v2654_v20  ;;  %2722 = vrot.lane.b32.xlu0 %v2721_v27, %s2846_s25  ;;  %v2657_v20 = vld [vmem:[#allocation2 + $0x78] sm:$0xff] }
  0xb3   :  { %v3111_v29 = vadd.f32 %v3082_v7, %v800_v26  ;;  %v2639_v26 = vld [vmem:[#allocation2 + $0x80] sm:$0xff] }
  0xb5   :  { %v728_v28 = vpop.f32.mrf.mxu2  ;;  %v868_v33 = vmax.f32 %v3111_v29, 0.0 }
  0xb6   :  { %v443_v30 = vpop.f32.mrf.mxu1  ;;  %v327_v32 = vpop.f32.mrf.mxu0 }
  0xb7   :  { %v444_v31 = vadd.f32 %v443_v30, %v322_v12 }
  0xb9   :  { %v801_v34 = vadd.f32 %v725_v19, %v444_v31 }
  0xbb   :  { %v3116_v35 = vadd.f32 %v3082_v7, %v801_v34 }
  0xbd   :  { %v730_v38 = vpop.f32.mrf.mxu2  ;;  %v869_v39 = vmax.f32 %v3116_v35, 0.0 }
  0xbe   :  { %v446_v41 = vpop.f32.mrf.mxu1  ;;  %v330_v44 = vpop.f32.mrf.mxu0 }
  0xbf   :  { %v447_v43 = vadd.f32 %v446_v41, %v325_v25  ;;  %v2726_v47 = vpack.i.bf16 %v869_v39, %v868_v33  ;;  %v2658_v41 = vld [vmem:[#allocation2 + $0x80] sm:$0xff] }
  0xc1   :  { %v802_v45 = vadd.f32 %v728_v28, %v447_v43  ;;  %2252 = vmatmul.msk.bf16.gmra.mxu1 %vm257_vm1, %v2629_v3  ;;  %2217 = vmatmul.msk.bf16.gmra.mxu0 %vm257_vm1, %v2631_v42  ;;  %v3157_v3 = vld [vmem:[#allocation2 + $0x78] sm:$0xff] }
  0xc2   :  { %2357 = vmatmul.msk.bf16.gmra.mxu2 %vm257_vm1, %v2655_v40  ;;  %2727 = vrot.lane.b32.xlu0 %v2726_v47, %s2846_s25 }
  0xc3   :  { %v3139_v49 = vadd.f32 %v3082_v7, %v802_v45  ;;  %2220 = vmatmul.msk.bf16.gmra.mxu3 %vm257_vm1, %v3157_v3 }
  0xc5   :  { %v733_v48 = vpop.f32.mrf.mxu2  ;;  %v870_v54 = vmax.f32 %v3139_v49, 0.0 }
  0xc6   :  { %v448_v50 = vpop.f32.mrf.mxu1  ;;  %v332_v52 = vpop.f32.mrf.mxu0 }
  0xc7   :  { %v449_v51 = vadd.f32 %v448_v50, %v327_v32 }
  0xc9   :  { %v803_v53 = vadd.f32 %v730_v38, %v449_v51 }
  0xcb   :  { %v3144_v55 = vadd.f32 %v3082_v7, %v803_v53 }
  0xcd   :  { %v735_v59 = vpop.f32.mrf.mxu2  ;;  %v871_v61 = vmax.f32 %v3144_v55, 0.0 }
  0xce   :  { %v451_v63 = vpop.f32.mrf.mxu1  ;;  %v335_v1 = vpop.f32.mrf.mxu0 }
  0xcf   :  { %v452_v0 = vadd.f32 %v451_v63, %v330_v44  ;;  %v2731_v4 = vpack.i.bf16 %v871_v61, %v870_v54 }
  0xd1   :  { %v804_v2 = vadd.f32 %v733_v48, %v452_v0  ;;  %2253 = vmatmul.msk.bf16.gmra.mxu1 %vm257_vm1, %v2630_v23  ;;  %2732 = vrot.lane.b32.xlu1 %v2731_v4, %s2846_s25  ;;  %v2659_v0 = vld [vmem:[#allocation2 + $0x88] sm:$0xff] }
  0xd2   :  { %2358 = vmatmul.msk.bf16.gmra.mxu2 %vm257_vm1, %v2656_v60 }
  0xd3   :  { %v3166_v6 = vadd.f32 %v3082_v7, %v804_v2  ;;  %2221 = vmatmul.msk.bf16.gmra.mxu3 %vm257_vm1, %v2639_v26 }
  0xd5   :  { %v738_v5 = vpop.f32.mrf.mxu2  ;;  %v872_v12 = vmax.f32 %v3166_v6, 0.0 }
  0xd6   :  { %v453_v8 = vpop.f32.mrf.mxu1  ;;  %v337_v11 = vpop.f32.mrf.mxu0 }
  0xd7   :  { %v454_v10 = vadd.f32 %v453_v8, %v332_v52 }
  0xd9   :  { %v805_v13 = vadd.f32 %v735_v59, %v454_v10 }
  0xdb   :  { %v3171_v16 = vadd.f32 %v3082_v7, %v805_v13 }
  0xdd   :  { %v740_v18 = vpop.f32.mrf.mxu2  ;;  %v873_v19 = vmax.f32 %v3171_v16, 0.0 }
  0xde   :  { %v456_v22 = vpop.f32.mrf.mxu1  ;;  %v340_v24 = vpop.f32.mrf.mxu0 }
  0xdf   :  { %v457_v23 = vadd.f32 %v456_v22, %v335_v1  ;;  %v2736_v27 = vpack.i.bf16 %v873_v19, %v872_v12 }
  0xe1   :  { %v806_v25 = vadd.f32 %v738_v5, %v457_v23  ;;  %2254 = vmatmul.msk.bf16.gmra.mxu1 %vm257_vm1, %v2631_v42  ;;  %2737 = vrot.lane.b32.xlu1 %v2736_v27, %s2846_s25 }
  0xe2   :  { %2359 = vmatmul.msk.bf16.gmra.mxu2 %vm257_vm1, %v2657_v20 }
  0xe3   :  { %v3182_v30 = vadd.f32 %v3082_v7, %v806_v25 }
  0xe5   :  { %v743_v28 = vpop.f32.mrf.mxu2  ;;  %v874_v37 = vmax.f32 %v3182_v30, 0.0 }
  0xe6   :  { %v458_v31 = vpop.f32.mrf.mxu1  ;;  %v342_v34 = vpop.f32.mrf.mxu0 }
  0xe7   :  { %v459_v32 = vadd.f32 %v458_v31, %v337_v11 }
  0xe9   :  { %v807_v36 = vadd.f32 %v740_v18, %v459_v32 }
  0xeb   :  { %v3187_v38 = vadd.f32 %v3082_v7, %v807_v36 }
  0xed   :  { %v745_v40 = vpop.f32.mrf.mxu2  ;;  %v875_v42 = vmax.f32 %v3187_v38, 0.0 }
  0xee   :  { %v461_v43 = vpop.f32.mrf.mxu1  ;;  %v345_v45 = vpop.f32.mrf.mxu0 }
  0xef   :  { %v462_v44 = vadd.f32 %v461_v43, %v340_v24  ;;  %v2741_v48 = vpack.i.bf16 %v875_v42, %v874_v37 }
  0xf1   :  { %v808_v47 = vadd.f32 %v743_v28, %v462_v44  ;;  %2255 = vmatmul.msk.bf16.gmra.mxu1 %vm257_vm1, %v2957_v17  ;;  %2742 = vrot.lane.b32.xlu2 %v2741_v48, %s2846_s25 }
  0xf2   :  { %2360 = vmatmul.msk.bf16.gmra.mxu2 %vm257_vm1, %v2658_v41 }
  0xf3   :  { %v3198_v51 = vadd.f32 %v3082_v7, %v808_v47 }
  0xf5   :  { %v748_v50 = vpop.f32.mrf.mxu2  ;;  %v876_v57 = vmax.f32 %v3198_v51, 0.0 }
  0xf6   :  { %v463_v52 = vpop.f32.mrf.mxu1  ;;  %v347_v56 = vpop.f32.mrf.mxu0 }
  0xf7   :  { %v464_v53 = vadd.f32 %v463_v52, %v342_v34  ;;  %v2679_v52 = vld [vmem:[%s3756_s3 + $0x30] sm:$0xff] }
  0xf9   :  { %v809_v59 = vadd.f32 %v745_v40, %v464_v53 }
  0xfb   :  { %v3203_v17 = vadd.f32 %v3082_v7, %v809_v59 }
  0xfd   :  { %v750_v60 = vpop.f32.mrf.mxu2  ;;  %v877_v63 = vmax.f32 %v3203_v17, 0.0 }
  0xfe   :  { %v466_v1 = vpop.f32.mrf.mxu1  ;;  %v350_v4 = vpop.f32.mrf.mxu0 }
  0xff   :  { %v467_v2 = vadd.f32 %v466_v1, %v345_v45  ;;  %v2746_v8 = vpack.i.bf16 %v877_v63, %v876_v57 }
 0x101   :  { %v810_v5 = vadd.f32 %v748_v50, %v467_v2  ;;  %2256 = vmatmul.msk.bf16.gmra.mxu1 %vm257_vm1, %v3129_v46  ;;  %2747 = vrot.lane.b32.xlu2 %v2746_v8, %s2846_s25 }
 0x102   :  { %2361 = vmatmul.msk.bf16.gmra.mxu2 %vm257_vm1, %v2659_v0 }
 0x103   :  { %v3214_v11 = vadd.f32 %v3082_v7, %v810_v5  ;;  %v2677_v5 = vld [vmem:[%s3756_s3 + $0x20] sm:$0xff] }
 0x105   :  { %v753_v10 = vpop.f32.mrf.mxu2  ;;  %v878_v22 = vmax.f32 %v3214_v11, 0.0  ;;  %v2675_v11 = vld [vmem:[%s3756_s3 + $0x18] sm:$0xff] }
 0x106   :  { %v468_v13 = vpop.f32.mrf.mxu1  ;;  %v352_v20 = vpop.f32.mrf.mxu0 }
 0x107   :  { %v469_v18 = vadd.f32 %v468_v13, %v347_v56 }
 0x109   :  { %v811_v23 = vadd.f32 %v750_v60, %v469_v18  ;;  %v2678_v60 = vld [vmem:[%s3756_s3 + $0x28] sm:$0xff] }
 0x10b   :  { %v3219_v46 = vadd.f32 %v3082_v7, %v811_v23 }
 0x10d   :  { %v755_v24 = vpop.f32.mrf.mxu2  ;;  %v879_v25 = vmax.f32 %v3219_v46, 0.0 }
 0x10e   :  { %v471_v26 = vpop.f32.mrf.mxu1  ;;  %v355_v28 = vpop.f32.mrf.mxu0 }
 0x10f   :  { %v472_v27 = vadd.f32 %v471_v26, %v350_v4  ;;  %v2751_v32 = vpack.i.bf16 %v879_v25, %v878_v22 }
 0x111   :  { %v812_v31 = vadd.f32 %v753_v10, %v472_v27  ;;  %2257 = vmatmul.msk.bf16.gmra.mxu1 %vm257_vm1, %v3157_v3  ;;  %2752 = vrot.lane.b32.xlu0 %v2751_v32, %s2846_s25  ;;  %v2680_v3 = vld [vmem:[%s3756_s3 + $0x38] sm:$0xff] }
 0x112   :  { %1365 = vmatpush.bf16.msrb.mxu3 %v2680_v3 }
 0x113   :  { %v3229_v36 = vadd.f32 %v3082_v7, %v812_v31 }
 0x115   :  { %v758_v34 = vpop.f32.mrf.mxu2  ;;  %v880_v44 = vmax.f32 %v3229_v36, 0.0 }
 0x116   :  { %v473_v40 = vpop.f32.mrf.mxu1  ;;  %v357_v43 = vpop.f32.mrf.mxu0  ;;  %1366 = vmatpush.bf16.msrb.mxu3 %v2679_v52 }
 0x117   :  { %v474_v41 = vadd.f32 %v473_v40, %v352_v20 }
 0x119   :  { %v813_v45 = vadd.f32 %v755_v24, %v474_v41 }
 0x11a   :  { %1367 = vmatpush.bf16.msrb.mxu3 %v2678_v60 }
 0x11b   :  { %v3237_v47 = vadd.f32 %v3082_v7, %v813_v45 }
 0x11d   :  { %v760_v48 = vpop.f32.mrf.mxu2  ;;  %v881_v50 = vmax.f32 %v3237_v47, 0.0 }
 0x11e   :  { %v476_v53 = vpop.f32.mrf.mxu1  ;;  %v360_v0 = vpop.f32.mrf.mxu0  ;;  %1368 = vmatpush.bf16.msrb.mxu3 %v2677_v5 }
 0x11f   :  { %v477_v56 = vadd.f32 %v476_v53, %v355_v28  ;;  %v2756_v1 = vpack.i.bf16 %v881_v50, %v880_v44 }
 0x121   :  { %v814_v59 = vadd.f32 %v758_v34, %v477_v56  ;;  %2757 = vrot.lane.b32.xlu1 %v2756_v1, %s2846_s25  ;;  %v2692_v1 = vld [vmem:[%s3756_s3 + $0x58] sm:$0xff] }
 0x122   :  { %1608 = vmatpush.bf16.msrb.mxu0 %v2692_v1  ;;  %1446 = vmatpush.bf16.msra.mxu3 %v2675_v11 }
 0x123   :  { %v3251_v4 = vadd.f32 %v3082_v7, %v814_v59 }
 0x124   :  { %v2723_v28 = vpop.permute.xlu0 %2722 }
 0x125   :  { %v763_v2 = vpop.f32.mrf.mxu2  ;;  %v882_v13 = vmax.f32 %v3251_v4, 0.0  ;;  %v2724_v45 = vunpack.i.l.bf16 %v2723_v28 }
 0x126   :  { %v478_v8 = vpop.f32.mrf.mxu1  ;;  %v362_v24 = vpop.f32.mrf.mxu0  ;;  %1609 = vmatpush.bf16.msrb.mxu0 %v2691_v9 }
 0x127   :  { %v479_v10 = vadd.f32 %v478_v8, %v357_v43  ;;  %v2725_v43 = vunpack.i.h.bf16 %v2723_v28  ;;  %v1090_v5 = vmax.f32 %v866_v14, %v2724_v45 }
 0x129   :  { %v815_v18 = vadd.f32 %v760_v48, %v479_v10 }
 0x12b   :  { %v3259_v20 = vadd.f32 %v3082_v7, %v815_v18 }
 0x12d   :  { %v765_v23 = vpop.f32.mrf.mxu2  ;;  %v883_v26 = vmax.f32 %v3259_v20, 0.0 }
 0x12e   :  { %v481_v27 = vpop.f32.mrf.mxu1  ;;  %v365_v48 = vpop.f32.mrf.mxu0 }
 0x12f   :  { %v482_v31 = vadd.f32 %v481_v27, %v360_v0  ;;  %v2761_v34 = vpack.i.bf16 %v883_v26, %v882_v13 }
 0x131   :  { %v816_v32 = vadd.f32 %v763_v2, %v482_v31  ;;  %2762 = vrot.lane.b32.xlu2 %v2761_v34, %s2846_s25  ;;  %v1091_v2 = vmax.f32 %v867_v21, %v2725_v43 }
 0x133   :  { %v3267_v41 = vadd.f32 %v3082_v7, %v816_v32 }
 0x134   :  { %v2728_v53 = vpop.permute.xlu0 %2727 }
 0x135   :  { %v768_v40 = vpop.f32.mrf.mxu2  ;;  %v2730_v56 = vunpack.i.h.bf16 %v2728_v53  ;;  %v2729_v59 = vunpack.i.l.bf16 %v2728_v53  ;;  %v884_v60 = vmax.f32 %v3267_v41, 0.0 }
 0x136   :  { %v483_v3 = vpop.f32.mrf.mxu1  ;;  %v367_v29 = vpop.f32.mrf.mxu0 }
 0x137   :  { %v484_v52 = vadd.f32 %v483_v3, %v362_v24  ;;  %v1093_v8 = vmax.f32 %v869_v39, %v2730_v56  ;;  %v1092_v10 = vmax.f32 %v868_v33, %v2729_v59  ;;  %v2690_v39 = vld [vmem:[%s3756_s3 + $0x48] sm:$0xff] }
 0x138   :  { %1610 = vmatpush.bf16.msrb.mxu0 %v2690_v39 }
 0x139   :  { %v817_v0 = vadd.f32 %v765_v23, %v484_v52  ;;  %v1163_v23 = vmax.f32 %v1091_v2, %v1093_v8  ;;  %v1162_v24 = vmax.f32 %v1090_v5, %v1092_v10 }
 0x13b   :  { %v3283_v18 = vadd.f32 %v3082_v7, %v817_v0  ;;  %v1165_v14 = vpack.c.bf16 %v1163_v23, %v1163_v23  ;;  %v1164_v15 = vpack.c.bf16 %v1162_v24, %v1162_v24 }
 0x13d   :  { %v770_v27 = vpop.f32.mrf.mxu2  ;;  %v885_v28 = vmax.f32 %v3283_v18, 0.0  ;;  %1167 = vst.msk [vmem:[#allocation3 + $0xc] sm:$0xf] %vm33_vm0, %v1165_v14 }
 0x13e   :  { %v486_v21 = vpop.f32.mrf.mxu1  ;;  %1166 = vst.msk [vmem:[#allocation3 + $0x8] sm:$0xf] %vm33_vm0, %v1164_v15  ;;  %v370_v53 = vpop.f32.mrf.mxu0 }
 0x13f   :  { %v487_v35 = vadd.f32 %v486_v21, %v365_v48  ;;  %v2766_v31 = vpack.i.bf16 %v885_v28, %v884_v60 }
 0x141   :  { %v818_v33 = vadd.f32 %v768_v40, %v487_v35  ;;  %2767 = vrot.lane.b32.xlu0 %v2766_v31, %s2846_s25  ;;  %v2689_v40 = vld [vmem:[%s3756_s3 + $0x40] sm:$0xff] }
 0x142   :  { %1611 = vmatpush.bf16.msrb.mxu0 %v2689_v40 }
 0x143   :  { %v3299_v34 = vadd.f32 %v3082_v7, %v818_v33  ;;  %v2733_v2 = vpop.permute.xlu1 %2732 }
 0x144   :  { %v2735_v9 = vunpack.i.h.bf16 %v2733_v2  ;;  %v2734_v14 = vunpack.i.l.bf16 %v2733_v2 }
 0x145   :  { %v773_v32 = vpop.f32.mrf.mxu2  ;;  %v3305_v3 = vld [vmem:[#allocation3 + $0x8] sm:$0xff]  ;;  %v886_v48 = vmax.f32 %v3299_v34, 0.0  ;;  %v2673_v34 = vld [vmem:[%s3756_s3 + $0x8] sm:$0xff] }
 0x146   :  { %v488_v43 = vpop.f32.mrf.mxu1  ;;  %2418 = vmatmul.msk.bf16.vlgmr.msrb.gmra.mxu3 %vm257_vm1, %v3305_v3  ;;  %v372_v23 = vpop.f32.mrf.mxu0  ;;  %v1095_v40 = vmax.f32 %v871_v61, %v2735_v9 }
 0x147   :  { %v489_v45 = vadd.f32 %v488_v43, %v367_v29  ;;  %v1094_v43 = vmax.f32 %v870_v54, %v2734_v14 }
 0x149   :  { %v819_v52 = vadd.f32 %v770_v27, %v489_v45 }
 0x14b   :  { %v3311_v56 = vadd.f32 %v3082_v7, %v819_v52  ;;  %v2743_v21 = vpop.permute.xlu2 %2742 }
 0x14c   :  { %v2744_v55 = vunpack.i.l.bf16 %v2743_v21 }
 0x14d   :  { %v775_v59 = vpop.f32.mrf.mxu2  ;;  %v887_v0 = vmax.f32 %v3311_v56, 0.0 }
 0x14e   :  { %v491_v1 = vpop.f32.mrf.mxu1  ;;  %v1098_v9 = vmax.f32 %v874_v37, %v2744_v55 }
 0x14f   :  { %v492_v5 = vadd.f32 %v491_v1, %v370_v53  ;;  %v2771_v10 = vpack.i.bf16 %v887_v0, %v886_v48 }
 0x151   :  { %v820_v8 = vadd.f32 %v773_v32, %v492_v5  ;;  %2772 = vrot.lane.b32.xlu1 %v2771_v10, %s2846_s25 }
 0x153   :  { %v3319_v27 = vadd.f32 %v3082_v7, %v820_v8  ;;  %v2738_v29 = vpop.permute.xlu1 %2737  ;;  %v2745_v8 = vunpack.i.h.bf16 %v2743_v21 }
 0x154   :  { %v2740_v33 = vunpack.i.h.bf16 %v2738_v29  ;;  %v2739_v39 = vunpack.i.l.bf16 %v2738_v29 }
 0x155   :  { %v778_v24 = vpop.f32.mrf.mxu2  ;;  %v888_v31 = vmax.f32 %v3319_v27, 0.0 }
 0x156   :  { %v493_v15 = vpop.f32.mrf.mxu1  ;;  %v1097_v45 = vmax.f32 %v873_v19, %v2740_v33  ;;  %v1096_v52 = vmax.f32 %v872_v12, %v2739_v39 }
 0x157   :  { %v494_v35 = vadd.f32 %v493_v15, %v372_v23  ;;  %v1099_v23 = vmax.f32 %v875_v42, %v2745_v8 }
 0x158   :  { %v1173_v1 = vmax.f32 %v1095_v40, %v1097_v45  ;;  %v1172_v2 = vmax.f32 %v1094_v43, %v1096_v52 }
 0x159   :  { %v821_v32 = vadd.f32 %v775_v59, %v494_v35 }
 0x15a   :  { %v1175_v61 = vpack.c.bf16 %v1173_v1, %v1173_v1  ;;  %v1174_v10 = vpack.c.bf16 %v1172_v2, %v1172_v2 }
 0x15b   :  { %v3332_v53 = vadd.f32 %v3082_v7, %v821_v32  ;;  %v2748_v16 = vpop.permute.xlu2 %2747 }
 0x15c   :  { %1177 = vst.msk [vmem:[#allocation3 + $0x14] sm:$0xf] %vm33_vm0, %v1175_v61  ;;  %v2750_v6 = vunpack.i.h.bf16 %v2748_v16  ;;  %v2749_v12 = vunpack.i.l.bf16 %v2748_v16 }
 0x15d   :  { %v780_v5 = vpop.f32.mrf.mxu2  ;;  %v889_v59 = vmax.f32 %v3332_v53, 0.0  ;;  %1176 = vst.msk [vmem:[#allocation3 + $0x10] sm:$0xf] %vm33_vm0, %v1174_v10 }
 0x15e   :  { %v496_v49 = vpop.f32.mrf.mxu1  ;;  %v1101_v14 = vmax.f32 %v877_v63, %v2750_v6 }
 0x15f   :  { %v497_v54 = vadd.f32 %v496_v49, %v3072_v58  ;;  %v1100_v58 = vmax.f32 %v876_v57, %v2749_v12  ;;  %v2776_v15 = vpack.i.bf16 %v889_v59, %v888_v31 }
 0x160   :  { %v1183_v21 = vmax.f32 %v1099_v23, %v1101_v14 }
 0x161   :  { %v822_v19 = vadd.f32 %v778_v24, %v497_v54  ;;  %v1182_v35 = vmax.f32 %v1098_v9, %v1100_v58  ;;  %v380_v24 = vpop.f32.mrf.mxu3  ;;  %2777 = vrot.lane.b32.xlu2 %v2776_v15, %s2846_s25 }
 0x162   :  { %v1185_v30 = vpack.c.bf16 %v1183_v21, %v1183_v21 }
 0x163   :  { %v3351_v38 = vadd.f32 %v3082_v7, %v822_v19  ;;  %v1184_v37 = vpack.c.bf16 %v1182_v35, %v1182_v35 }
 0x164   :  { %1187 = vst.msk [vmem:[#allocation3 + $0x1c] sm:$0xf] %vm33_vm0, %v1185_v30  ;;  %v3356_v57 = vld [vmem:[#allocation3 + $0x10] sm:$0xff] }
 0x165   :  { %v783_v17 = vpop.f32.mrf.mxu2  ;;  %v2681_v63 = vld [vmem:[#allocation3 + $0x10] sm:$0xff]  ;;  %v890_v29 = vmax.f32 %v3351_v38, 0.0  ;;  %1186 = vst.msk [vmem:[#allocation3 + $0x18] sm:$0xf] %vm33_vm0, %v1184_v37  ;;  %2419 = vmatmul.msk.bf16.gmra.mxu3 %vm257_vm1, %v3356_v57 }
 0x166   :  { %v498_v42 = vpop.f32.mrf.mxu1  ;;  %2510 = vmatmul.msk.bf16.vlgmr.msrb.gmra.mxu0 %vm257_vm1, %v2681_v63 }
 0x167   :  { %v499_v51 = vadd.f32 %v498_v42, %v3077_v62 }
 0x169   :  { %v823_v33 = vadd.f32 %v780_v5, %v499_v51  ;;  %v382_v32 = vpop.f32.mrf.mxu3 }
 0x16b   :  { %v3364_v39 = vadd.f32 %v3082_v7, %v823_v33 }
 0x16c   :  { %v3375_v61 = vld [vmem:[#allocation3 + $0x18] sm:$0xff] }
 0x16d   :  { %v891_v62 = vmax.f32 %v3364_v39, 0.0  ;;  %v785_v45 = vpop.f32.mrf.mxu2  ;;  %v2682_v10 = vld [vmem:[#allocation3 + $0x18] sm:$0xff]  ;;  %v2672_v39 = vld [vmem:[%s3756_s3] sm:$0xff] }
 0x16e   :  { %v501_v40 = vpop.f32.mrf.mxu1 }
 0x16f   :  { %v502_v43 = vadd.f32 %v501_v40, %v380_v24  ;;  %v2781_v1 = vpack.i.bf16 %v891_v62, %v890_v29 }
 0x171   :  { %v824_v52 = vadd.f32 %v783_v17, %v502_v43  ;;  %2782 = vrot.lane.b32.xlu0 %v2781_v1, %s2846_s25  ;;  %v385_v55 = vpop.f32.mrf.mxu3 }
 0x173   :  { %v3372_v2 = vadd.f32 %v3082_v7, %v824_v52 }
 0x175   :  { %v892_v49 = vmax.f32 %v3372_v2, 0.0  ;;  %v788_v16 = vpop.f32.mrf.mxu2  ;;  %2420 = vmatmul.msk.bf16.gmra.mxu3 %vm257_vm1, %v3375_v61 }
 0x176   :  { %v503_v5 = vpop.f32.mrf.mxu1  ;;  %2511 = vmatmul.msk.bf16.gmra.mxu0 %vm257_vm1, %v2682_v10 }
 0x177   :  { %v504_v8 = vadd.f32 %v503_v5, %v382_v32 }
 0x179   :  { %v825_v54 = vadd.f32 %v785_v45, %v504_v8  ;;  %v387_v14 = vpop.f32.mrf.mxu3 }
 0x17b   :  { %v3382_v6 = vadd.f32 %v3082_v7, %v825_v54 }
 0x17d   :  { %v893_v12 = vmax.f32 %v3382_v6, 0.0  ;;  %v790_v15 = vpop.f32.mrf.mxu2 }
 0x17e   :  { %v506_v19 = vpop.f32.mrf.mxu1 }
 0x17f   :  { %v507_v23 = vadd.f32 %v506_v19, %v385_v55  ;;  %v2786_v58 = vpack.i.bf16 %v893_v12, %v892_v49 }
 0x181   :  { %v826_v9 = vadd.f32 %v788_v16, %v507_v23  ;;  %2787 = vrot.lane.b32.xlu1 %v2786_v58, %s2846_s25  ;;  %v390_v17 = vpop.f32.mrf.mxu3 }
 0x183   :  { %v3390_v21 = vadd.f32 %v3082_v7, %v826_v9  ;;  %v2753_v43 = vpop.permute.xlu0 %2752 }
 0x184   :  { %v2755_v1 = vunpack.i.h.bf16 %v2753_v43  ;;  %v2754_v5 = vunpack.i.l.bf16 %v2753_v43 }
 0x185   :  { %v894_v30 = vmax.f32 %v3390_v21, 0.0  ;;  %v793_v63 = vpop.f32.mrf.mxu2 }
 0x186   :  { %v508_v35 = vpop.f32.mrf.mxu1  ;;  %v1103_v58 = vmax.f32 %v879_v25, %v2755_v1 }
 0x187   :  { %v509_v24 = vadd.f32 %v508_v35, %v387_v14 }
 0x189   :  { %v827_v37 = vadd.f32 %v790_v15, %v509_v24  ;;  %v392_v8 = vpop.f32.mrf.mxu3  ;;  %v1102_v15 = vmax.f32 %v878_v22, %v2754_v5 }
 0x18b   :  { %v3395_v42 = vadd.f32 %v3082_v7, %v827_v37  ;;  %v2763_v25 = vpop.permute.xlu2 %2762 }
 0x18c   :  { %v2765_v36 = vunpack.i.h.bf16 %v2763_v25 }
 0x18d   :  { %v895_v51 = vmax.f32 %v3395_v42, 0.0  ;;  %v795_v16 = vpop.f32.mrf.mxu2 }
 0x18e   :  { %v511_v33 = vpop.f32.mrf.mxu1 }
 0x18f   :  { %v512_v32 = vadd.f32 %v511_v33, %v390_v17  ;;  %v2791_v45 = vpack.i.bf16 %v895_v51, %v894_v30 }
 0x191   :  { %v828_v40 = vadd.f32 %v793_v63, %v512_v32  ;;  %2792 = vrot.lane.b32.xlu2 %v2791_v45, %s2846_s25  ;;  %v1107_v45 = vmax.f32 %v883_v26, %v2765_v36 }
 0x193   :  { %v3403_v52 = vadd.f32 %v3082_v7, %v828_v40  ;;  %v2758_v54 = vpop.permute.xlu1 %2757 }
 0x194   :  { %v2760_v19 = vunpack.i.h.bf16 %v2758_v54  ;;  %v2759_v23 = vunpack.i.l.bf16 %v2758_v54 }
 0x195   :  { %v896_v9 = vmax.f32 %v3403_v52, 0.0 }
 0x196   :  { %v513_v55 = vpop.f32.mrf.mxu1  ;;  %v1105_v35 = vmax.f32 %v881_v50, %v2760_v19  ;;  %v1104_v24 = vmax.f32 %v880_v44, %v2759_v23  ;;  %v2764_v44 = vunpack.i.l.bf16 %v2763_v25 }
 0x197   :  { %v514_v10 = vadd.f32 %v513_v55, %v392_v8  ;;  %v2674_v55 = vld [vmem:[%s3756_s3 + $0x10] sm:$0xff] }
 0x198   :  { %v1193_v17 = vmax.f32 %v1103_v58, %v1105_v35  ;;  %v1192_v63 = vmax.f32 %v1102_v15, %v1104_v24  ;;  %v1106_v1 = vmax.f32 %v882_v13, %v2764_v44  ;;  %1447 = vmatpush.bf16.msra.mxu3 %v2674_v55 }
 0x199   :  { %v829_v14 = vadd.f32 %v795_v16, %v514_v10 }
 0x19a   :  { %v1195_v32 = vpack.c.bf16 %v1193_v17, %v1193_v17  ;;  %v1194_v40 = vpack.c.bf16 %v1192_v63, %v1192_v63 }
 0x19b   :  { %v3416_v37 = vadd.f32 %v3082_v7, %v829_v14 }
 0x19c   :  { %1197 = vst.msk [vmem:[#allocation3 + $0x24] sm:$0xf] %vm33_vm0, %v1195_v32  ;;  %1448 = vmatpush.bf16.msra.mxu3 %v2673_v34  ;;  %v2699_v34 = vld [vmem:[%s3758_s5 + $0x30] sm:$0xff] }
 0x19d   :  { %v897_v33 = vmax.f32 %v3416_v37, 0.0  ;;  %1196 = vst.msk [vmem:[#allocation3 + $0x20] sm:$0xf] %vm33_vm0, %v1194_v40 }
 0x19f   :  { %v2796_v7 = vpack.i.bf16 %v897_v33, %v896_v9 }
 0x1a0   :  { %1449 = vmatpush.bf16.msra.mxu3 %v2672_v39 }
 0x1a1   :  { %2797 = vrot.lane.b32.xlu0 %v2796_v7, %s2846_s25 }
 0x1a4   :  { %v3429_v22 = vld [vmem:[#allocation3 + $0x20] sm:$0xff] }
 0x1a5   :  { %v2683_v46 = vld [vmem:[#allocation3 + $0x20] sm:$0xff]  ;;  %2421 = vmatmul.msk.bf16.gmra.mxu3 %vm257_vm1, %v3429_v22 }
 0x1a6   :  { %2512 = vmatmul.msk.bf16.gmra.mxu0 %vm257_vm1, %v2683_v46 }
 0x1b3   :  { %v2768_v47 = vpop.permute.xlu0 %2767 }
 0x1b4   :  { %v2770_v50 = vunpack.i.h.bf16 %v2768_v47  ;;  %v2769_v43 = vunpack.i.l.bf16 %v2768_v47 }
 0x1b6   :  { %v1109_v5 = vmax.f32 %v885_v28, %v2770_v50  ;;  %v1108_v8 = vmax.f32 %v884_v60, %v2769_v43 }
 0x1b8   :  { %v1203_v10 = vmax.f32 %v1107_v45, %v1109_v5  ;;  %v1202_v54 = vmax.f32 %v1106_v1, %v1108_v8 }
 0x1ba   :  { %v1205_v16 = vpack.c.bf16 %v1203_v10, %v1203_v10  ;;  %v1204_v19 = vpack.c.bf16 %v1202_v54, %v1202_v54 }
 0x1bb   :  { %v2778_v4 = vpop.permute.xlu2 %2777 }
 0x1bc   :  { %1207 = vst.msk [vmem:[#allocation3 + $0x2c] sm:$0xf] %vm33_vm0, %v1205_v16  ;;  %v2780_v13 = vunpack.i.h.bf16 %v2778_v4  ;;  %v2779_v20 = vunpack.i.l.bf16 %v2778_v4 }
 0x1bd   :  { %1206 = vst.msk [vmem:[#allocation3 + $0x28] sm:$0xf] %vm33_vm0, %v1204_v19 }
 0x1be   :  { %v1113_v23 = vmax.f32 %v889_v59, %v2780_v13  ;;  %v1112_v14 = vmax.f32 %v888_v31, %v2779_v20 }
 0x1c3   :  { %v2773_v26 = vpop.permute.xlu1 %2772 }
 0x1c4   :  { %v2775_v18 = vunpack.i.h.bf16 %v2773_v26  ;;  %v2774_v41 = vunpack.i.l.bf16 %v2773_v26  ;;  %v3447_v60 = vld [vmem:[#allocation3 + $0x28] sm:$0xff] }
 0x1c5   :  { %v2684_v28 = vld [vmem:[#allocation3 + $0x28] sm:$0xff]  ;;  %2422 = vmatmul.msk.bf16.gmra.mxu3 %vm257_vm1, %v3447_v60 }
 0x1c6   :  { %v1111_v58 = vmax.f32 %v887_v0, %v2775_v18  ;;  %v1110_v15 = vmax.f32 %v886_v48, %v2774_v41  ;;  %2513 = vmatmul.msk.bf16.gmra.mxu0 %vm257_vm1, %v2684_v28  ;;  %v2688_v26 = vld [vmem:[#allocation3 + $0x48] sm:$0xff] }
 0x1c8   :  { %v1212_v35 = vmax.f32 %v1110_v15, %v1112_v14  ;;  %v1213_v24 = vmax.f32 %v1111_v58, %v1113_v23 }
 0x1c9   :  { %v1370_v21 = vpop.f32.mrf.mxu3 }
 0x1ca   :  { %v1214_v17 = vpack.c.bf16 %v1212_v35, %v1212_v35  ;;  %v1215_v63 = vpack.c.bf16 %v1213_v24, %v1213_v24 }
 0x1cc   :  { %1216 = vst.msk [vmem:[#allocation3 + $0x30] sm:$0xf] %vm33_vm0, %v1214_v17  ;;  %v3541_v17 = vld [vmem:[%s3757_s4] ss:$0 sm:$0xff] }
 0x1cd   :  { %1217 = vst.msk [vmem:[#allocation3 + $0x34] sm:$0xf] %vm33_vm0, %v1215_v63 }
 0x1d4   :  { %v3462_v27 = vld [vmem:[#allocation3 + $0x30] sm:$0xff] }
 0x1d5   :  { %v2685_v56 = vld [vmem:[#allocation3 + $0x30] sm:$0xff]  ;;  %2423 = vmatmul.msk.bf16.gmra.mxu3 %vm257_vm1, %v3462_v27 }
 0x1d6   :  { %2514 = vmatmul.msk.bf16.gmra.mxu0 %vm257_vm1, %v2685_v56 }
 0x1e3   :  { %v2783_v48 = vpop.permute.xlu0 %2782  ;;  %v1613_v28 = vpop.f32.mrf.mxu0 }
 0x1e4   :  { %v2785_v0 = vunpack.i.h.bf16 %v2783_v48  ;;  %v2784_v31 = vunpack.i.l.bf16 %v2783_v48 }
 0x1e6   :  { %v1115_v40 = vmax.f32 %v891_v62, %v2785_v0  ;;  %v1114_v11 = vmax.f32 %v890_v29, %v2784_v31 }
 0x1eb   :  { %v2793_v62 = vpop.permute.xlu2 %2792  ;;  %v1615_v14 = vpop.f32.mrf.mxu0 }
 0x1ec   :  { %v2795_v2 = vunpack.i.h.bf16 %v2793_v62 }
 0x1ee   :  { %v1119_v43 = vmax.f32 %v895_v51, %v2795_v2  ;;  %v2664_v51 = vld [vmem:[#allocation3] sm:$0xff] }
 0x1f3   :  { %v2788_v53 = vpop.permute.xlu1 %2787 }
 0x1f4   :  { %v2790_v59 = vunpack.i.h.bf16 %v2788_v53  ;;  %v2789_v32 = vunpack.i.l.bf16 %v2788_v53 }
 0x1f6   :  { %v1117_v7 = vmax.f32 %v893_v12, %v2790_v59  ;;  %v1116_v46 = vmax.f32 %v892_v49, %v2789_v32  ;;  %v2794_v49 = vunpack.i.l.bf16 %v2793_v62 }
 0x1f8   :  { %v1223_v25 = vmax.f32 %v1115_v40, %v1117_v7  ;;  %v1222_v36 = vmax.f32 %v1114_v11, %v1116_v46  ;;  %v1118_v45 = vmax.f32 %v894_v30, %v2794_v49  ;;  %v1372_v30 = vpop.f32.mrf.mxu3  ;;  %v2695_v40 = vld [vmem:[%s3758_s5 + $0x10] sm:$0xff] }
 0x1fa   :  { %v1225_v44 = vpack.c.bf16 %v1223_v25, %v1223_v25  ;;  %v1224_v47 = vpack.c.bf16 %v1222_v36, %v1222_v36 }
 0x1fc   :  { %1227 = vst.msk [vmem:[#allocation3 + $0x3c] sm:$0xf] %vm33_vm0, %v1225_v44 }
 0x1fd   :  { %1226 = vst.msk [vmem:[#allocation3 + $0x38] sm:$0xf] %vm33_vm0, %v1224_v47 }
 0x200   :  { %v1375_v52 = vpop.f32.mrf.mxu3 }
 0x204   :  { %v2671_v38 = vld [vmem:[#allocation3 + $0x38] sm:$0xff] }
 0x205   :  { %v2686_v29 = vld [vmem:[#allocation3 + $0x38] sm:$0xff]  ;;  %2424 = vmatmul.msk.bf16.gmra.mxu3 %vm257_vm1, %v2671_v38 }
 0x206   :  { %2515 = vmatmul.msk.bf16.gmra.mxu0 %vm257_vm1, %v2686_v29 }
 0x213   :  { %v2798_v6 = vpop.permute.xlu0 %2797 }
 0x214   :  { %v2800_v12 = vunpack.i.h.bf16 %v2798_v6  ;;  %v2799_v50 = vunpack.i.l.bf16 %v2798_v6 }
 0x216   :  { %v1121_v1 = vmax.f32 %v897_v33, %v2800_v12  ;;  %v1120_v5 = vmax.f32 %v896_v9, %v2799_v50  ;;  %v1377_v9 = vpop.f32.mrf.mxu3 }
 0x218   :  { %v1232_v8 = vmax.f32 %v1118_v45, %v1120_v5  ;;  %v1233_v55 = vmax.f32 %v1119_v43, %v1121_v1 }
 0x21a   :  { %v1234_v10 = vpack.c.bf16 %v1232_v8, %v1232_v8  ;;  %v1235_v54 = vpack.c.bf16 %v1233_v55, %v1233_v55 }
 0x21c   :  { %1236 = vst.msk [vmem:[#allocation3 + $0x40] sm:$0xf] %vm33_vm0, %v1234_v10 }
 0x21d   :  { %1237 = vst.msk [vmem:[#allocation3 + $0x44] sm:$0xf] %vm33_vm0, %v1235_v54 }
 0x21e   :  { %v1380_v37 = vpop.f32.mrf.mxu3 }
 0x224   :  { %v2676_v16 = vld [vmem:[#allocation3 + $0x40] sm:$0xff] }
 0x225   :  { %v2687_v42 = vld [vmem:[#allocation3 + $0x40] sm:$0xff]  ;;  %2425 = vmatmul.msk.bf16.gmra.mxu3 %vm257_vm1, %v2676_v16 }
 0x226   :  { %2516 = vmatmul.msk.bf16.gmra.mxu0 %vm257_vm1, %v2687_v42  ;;  %v1382_v33 = vpop.f32.mrf.mxu3 }
 0x22e   :  { %v3502_v19 = vpop.f32.mrf.mxu3 }
 0x235   :  { %2446 = vmatmul.msk.bf16.vlgmr.msra.gmra.mxu3 %vm257_vm1, %v2664_v51 }
 0x236   :  { %v3506_v4 = vpop.f32.mrf.mxu3  ;;  %2517 = vmatmul.msk.bf16.gmra.mxu0 %vm257_vm1, %v2688_v26 }
 0x245   :  { %2447 = vmatmul.msk.bf16.gmra.mxu3 %vm257_vm1, %v3305_v3  ;;  %v2700_v3 = vld [vmem:[%s3758_s5 + $0x38] sm:$0xff] }
 0x246   :  { %1895 = vmatpush.bf16.msra.mxu1 %v2700_v3 }
 0x248   :  { %v3508_v13 = vpop.f32.mrf.mxu3 }
 0x24a   :  { %1896 = vmatpush.bf16.msra.mxu1 %v2699_v34 }
 0x250   :  { %v3518_v20 = vpop.f32.mrf.mxu3 }
 0x255   :  { %2448 = vmatmul.msk.bf16.gmra.mxu3 %vm257_vm1, %v3356_v57  ;;  %v2696_v57 = vld [vmem:[%s3758_s5 + $0x18] sm:$0xff] }
 0x256   :  { %1936 = vmatpush.bf16.msrb.mxu2 %v2696_v57 }
 0x25a   :  { %1937 = vmatpush.bf16.msrb.mxu2 %v2695_v40 }
 0x265   :  { %2449 = vmatmul.msk.bf16.gmra.mxu3 %vm257_vm1, %v3375_v61  ;;  %v3520_v61 = vpop.f32.mrf.mxu3 }
 0x275   :  { %2450 = vmatmul.msk.bf16.gmra.mxu3 %vm257_vm1, %v3429_v22  ;;  %v3525_v22 = vpop.f32.mrf.mxu3 }
 0x285   :  { %2451 = vmatmul.msk.bf16.gmra.mxu3 %vm257_vm1, %v3447_v60  ;;  %v1618_v60 = vpop.f32.mrf.mxu0 }
 0x288   :  { %v3529_v18 = vpop.f32.mrf.mxu3 }
 0x28d   :  { %v1620_v48 = vpop.f32.mrf.mxu0 }
 0x290   :  { %v3531_v41 = vpop.f32.mrf.mxu3 }
 0x295   :  { %2452 = vmatmul.msk.bf16.gmra.mxu3 %vm257_vm1, %v3462_v27  ;;  %v1623_v11 = vpop.f32.mrf.mxu0 }
 0x29d   :  { %v1625_v25 = vpop.f32.mrf.mxu0 }
 0x2a5   :  { %2453 = vmatmul.msk.bf16.gmra.mxu3 %vm257_vm1, %v2671_v38  ;;  %v1628_v39 = vpop.f32.mrf.mxu0 }
 0x2a8   :  { %v3534_v23 = vpop.f32.mrf.mxu3 }
 0x2ad   :  { %v1630_v5 = vpop.f32.mrf.mxu0 }
 0x2b0   :  { %v3536_v58 = vpop.f32.mrf.mxu3 }
 0x2b8   :  { %v1451_v15 = vpop.f32.mrf.mxu3 }
 0x2b9   :  { %v1452_v35 = vadd.f32 %v1451_v15, %v1370_v21 }
 0x2bb   :  { %v1653_v24 = vadd.f32 %v1613_v28, %v1452_v35 }
 0x2bd   :  { %v3544_v63 = vadd.f32 %v3541_v17, %v1653_v24 }
 0x2bf   :  { %v1689_v0 = vmax.f32 %v3544_v63, 0.0  ;;  %v2707_v63 = vld [vmem:[%s3758_s5 + $0x70] sm:$0xff] }
 0x2c0   :  { %v1453_v27 = vpop.f32.mrf.mxu3 }
 0x2c1   :  { %v1454_v56 = vadd.f32 %v1453_v27, %v1372_v30 }
 0x2c3   :  { %v1654_v31 = vadd.f32 %v1615_v14, %v1454_v56  ;;  %v2698_v56 = vld [vmem:[%s3758_s5 + $0x28] sm:$0xff] }
 0x2c4   :  { %1897 = vmatpush.bf16.msra.mxu1 %v2698_v56 }
 0x2c5   :  { %v3551_v53 = vadd.f32 %v3541_v17, %v1654_v31 }
 0x2c7   :  { %v1690_v59 = vmax.f32 %v3551_v53, 0.0  ;;  %v2705_v53 = vld [vmem:[%s3758_s5 + $0x60] sm:$0xff] }
 0x2c8   :  { %v1456_v32 = vpop.f32.mrf.mxu3 }
 0x2c9   :  { %v2801_v7 = vpack.i.bf16 %v1690_v59, %v1689_v0  ;;  %v1457_v29 = vadd.f32 %v1456_v32, %v1375_v52  ;;  %v1633_v52 = vpop.f32.mrf.mxu0 }
 0x2cb   :  { %2802 = vrot.lane.b32.xlu0 %v2801_v7, %s2846_s25  ;;  %v1655_v12 = vadd.f32 %v1618_v60, %v1457_v29  ;;  %v2704_v7 = vld [vmem:[%s3758_s5 + $0x58] sm:$0xff] }
 0x2cc   :  { %1993 = vmatpush.bf16.msrb.mxu3 %v2704_v7 }
 0x2cd   :  { %v3573_v8 = vadd.f32 %v3541_v17, %v1655_v12 }
 0x2cf   :  { %v1691_v42 = vmax.f32 %v3573_v8, 0.0 }
 0x2d0   :  { %v1458_v46 = vpop.f32.mrf.mxu3 }
 0x2d1   :  { %v1459_v38 = vadd.f32 %v1458_v46, %v1377_v9  ;;  %v1635_v60 = vpop.f32.mrf.mxu0 }
 0x2d3   :  { %v1656_v49 = vadd.f32 %v1620_v48, %v1459_v38 }
 0x2d5   :  { %v3567_v45 = vadd.f32 %v3541_v17, %v1656_v49 }
 0x2d7   :  { %v1692_v54 = vmax.f32 %v3567_v45, 0.0 }
 0x2d8   :  { %v1461_v36 = vpop.f32.mrf.mxu3 }
 0x2d9   :  { %v1462_v44 = vadd.f32 %v1461_v36, %v1380_v37  ;;  %v2811_v57 = vpack.i.bf16 %v1692_v54, %v1691_v42 }
 0x2db   :  { %v1657_v47 = vadd.f32 %v1623_v11, %v1462_v44 }
 0x2dd   :  { %v3563_v62 = vadd.f32 %v3541_v17, %v1657_v47 }
 0x2df   :  { %v1693_v50 = vmax.f32 %v3563_v62, 0.0 }
 0x2e0   :  { %v1463_v2 = vpop.f32.mrf.mxu3 }
 0x2e1   :  { %v1464_v6 = vadd.f32 %v1463_v2, %v1382_v33 }
 0x2e3   :  { %v1658_v43 = vadd.f32 %v1625_v25, %v1464_v6 }
 0x2e5   :  { %v3570_v1 = vadd.f32 %v3541_v17, %v1658_v43 }
 0x2e7   :  { %v1694_v55 = vmax.f32 %v3570_v1, 0.0 }
 0x2e8   :  { %v1466_v10 = vpop.f32.mrf.mxu3 }
 0x2e9   :  { %v1467_v16 = vadd.f32 %v1466_v10, %v3502_v19  ;;  %v2806_v30 = vpack.i.bf16 %v1694_v55, %v1693_v50 }
 0x2eb   :  { %v1659_v21 = vadd.f32 %v1628_v39, %v1467_v16  ;;  %2807 = vrot.lane.b32.xlu1 %v2806_v30, %s2846_s25 }
 0x2ed   :  { %v3584_v51 = vadd.f32 %v3541_v17, %v1659_v21 }
 0x2ef   :  { %v1695_v33 = vmax.f32 %v3584_v51, 0.0 }
 0x2f0   :  { %v1468_v9 = vpop.f32.mrf.mxu3 }
 0x2f1   :  { %v1469_v37 = vadd.f32 %v1468_v9, %v3506_v4 }
 0x2f3   :  { %v1660_v19 = vadd.f32 %v1630_v5, %v1469_v37  ;;  %2812 = vrot.lane.b32.xlu1 %v2811_v57, %s2846_s25 }
 0x2f5   :  { %v3590_v3 = vadd.f32 %v3541_v17, %v1660_v19 }
 0x2f7   :  { %v1696_v26 = vmax.f32 %v3590_v3, 0.0 }
 0x2f8   :  { %v1471_v28 = vpop.f32.mrf.mxu3 }
 0x2f9   :  { %v1472_v14 = vadd.f32 %v1471_v28, %v3508_v13  ;;  %v2816_v15 = vpack.i.bf16 %v1696_v26, %v1695_v33  ;;  %v1638_v13 = vpop.f32.mrf.mxu0 }
 0x2fb   :  { %v1661_v4 = vadd.f32 %v1633_v52, %v1472_v14  ;;  %2817 = vrot.lane.b32.xlu2 %v2816_v15, %s2846_s25 }
 0x2fd   :  { %v3604_v35 = vadd.f32 %v3541_v17, %v1661_v4 }
 0x2ff   :  { %v1697_v34 = vmax.f32 %v3604_v35, 0.0 }
 0x300   :  { %v1473_v24 = vpop.f32.mrf.mxu3 }
 0x301   :  { %v1474_v27 = vadd.f32 %v1473_v24, %v3518_v20  ;;  %v2694_v20 = vld [vmem:[%s3758_s5 + $0x8] sm:$0xff]  ;;  %v1640_v25 = vpop.f32.mrf.mxu0 }
 0x302   :  { %1938 = vmatpush.bf16.msrb.mxu2 %v2694_v20 }
 0x303   :  { %v1662_v48 = vadd.f32 %v1635_v60, %v1474_v27 }
 0x305   :  { %v3613_v31 = vadd.f32 %v3541_v17, %v1662_v48  ;;  %v2697_v48 = vld [vmem:[%s3758_s5 + $0x20] sm:$0xff] }
 0x306   :  { %1898 = vmatpush.bf16.msra.mxu1 %v2697_v48 }
 0x307   :  { %v1698_v32 = vmax.f32 %v3613_v31, 0.0 }
 0x308   :  { %v1476_v40 = vpop.f32.mrf.mxu3 }
 0x309   :  { %v1477_v11 = vadd.f32 %v1476_v40, %v3520_v61  ;;  %v2821_v36 = vpack.i.bf16 %v1698_v32, %v1697_v34  ;;  %v1643_v29 = vpop.f32.mrf.mxu0  ;;  %v2693_v40 = vld [vmem:[%s3758_s5] sm:$0xff] }
 0x30a   :  { %1939 = vmatpush.bf16.msrb.mxu2 %v2693_v40 }
 0x30b   :  { %v1663_v46 = vadd.f32 %v1638_v13, %v1477_v11  ;;  %2822 = vrot.lane.b32.xlu2 %v2821_v36, %s2846_s25  ;;  %v2701_v11 = vld [vmem:[%s3758_s5 + $0x40] sm:$0xff] }
 0x30d   :  { %v3628_v44 = vadd.f32 %v3541_v17, %v1663_v46 }
 0x30f   :  { %v1699_v39 = vmax.f32 %v3628_v44, 0.0 }
 0x310   :  { %v1478_v61 = vpop.f32.mrf.mxu3 }
 0x311   :  { %v1479_v47 = vadd.f32 %v1478_v61, %v3525_v22  ;;  %v1645_v10 = vpop.f32.mrf.mxu0 }
 0x313   :  { %v1664_v38 = vadd.f32 %v1640_v25, %v1479_v47 }
 0x315   :  { %v3634_v2 = vadd.f32 %v3541_v17, %v1664_v38 }
 0x317   :  { %v1700_v49 = vmax.f32 %v3634_v2, 0.0 }
 0x318   :  { %v1481_v6 = vpop.f32.mrf.mxu3 }
 0x319   :  { %v1482_v12 = vadd.f32 %v1481_v6, %v3529_v18  ;;  %v2826_v5 = vpack.i.bf16 %v1700_v49, %v1699_v39  ;;  %v2703_v18 = vld [vmem:[%s3758_s5 + $0x50] sm:$0xff]  ;;  %v1648_v37 = vpop.f32.mrf.mxu0 }
 0x31a   :  { %1994 = vmatpush.bf16.msrb.mxu3 %v2703_v18 }
 0x31b   :  { %v1665_v43 = vadd.f32 %v1643_v29, %v1482_v12  ;;  %2827 = vrot.lane.b32.xlu0 %v2826_v5, %s2846_s25 }
 0x31d   :  { %v3643_v22 = vadd.f32 %v3541_v17, %v1665_v43 }
 0x31f   :  { %v1701_v30 = vmax.f32 %v3643_v22, 0.0 }
 0x320   :  { %v1483_v16 = vpop.f32.mrf.mxu3 }
 0x321   :  { %v1484_v21 = vadd.f32 %v1483_v16, %v3531_v41  ;;  %v1650_v15 = vpop.f32.mrf.mxu0 }
 0x323   :  { %v1666_v52 = vadd.f32 %v1645_v10, %v1484_v21 }
 0x325   :  { %v3652_v9 = vadd.f32 %v3541_v17, %v1666_v52 }
 0x327   :  { %v1702_v19 = vmax.f32 %v3652_v9, 0.0 }
 0x328   :  { %v1486_v57 = vpop.f32.mrf.mxu3 }
 0x329   :  { %v1487_v28 = vadd.f32 %v1486_v57, %v3534_v23  ;;  %v2831_v41 = vpack.i.bf16 %v1702_v19, %v1701_v30 }
 0x32b   :  { %v1667_v14 = vadd.f32 %v1648_v37, %v1487_v28  ;;  %2832 = vrot.lane.b32.xlu1 %v2831_v41, %s2846_s25 }
 0x32d   :  { %v3661_v60 = vadd.f32 %v3541_v17, %v1667_v14 }
 0x32f   :  { %v1703_v27 = vmax.f32 %v3661_v60, 0.0  ;;  %v2709_v60 = vld [vmem:[%s3761_s7] sm:$0xff] }
 0x330   :  { %v1488_v4 = vpop.f32.mrf.mxu3 }
 0x331   :  { %v1489_v24 = vadd.f32 %v1488_v4, %v3536_v58 }
 0x333   :  { %v1668_v56 = vadd.f32 %v1650_v15, %v1489_v24 }
 0x335   :  { %v3667_v23 = vadd.f32 %v3541_v17, %v1668_v56  ;;  %v2702_v17 = vld [vmem:[%s3758_s5 + $0x48] sm:$0xff] }
 0x336   :  { %1995 = vmatpush.bf16.msrb.mxu3 %v2702_v17 }
 0x337   :  { %v1704_v13 = vmax.f32 %v3667_v23, 0.0 }
 0x339   :  { %v2836_v58 = vpack.i.bf16 %v1704_v13, %v1703_v27 }
 0x33a   :  { %1996 = vmatpush.bf16.msrb.mxu3 %v2701_v11 }
 0x33b   :  { %2837 = vrot.lane.b32.xlu2 %v2836_v58, %s2846_s25 }
 0x33d   :  { %v2803_v12 = vpop.permute.xlu0 %2802 }
 0x33e   :  { %v2805_v10 = vunpack.i.h.bf16 %v2803_v12  ;;  %v2804_v16 = vunpack.i.l.bf16 %v2803_v12 }
 0x340   :  { %v1802_v51 = vmax.f32 %v1690_v59, %v2805_v10  ;;  %v1801_v1 = vmax.f32 %v1689_v0, %v2804_v16  ;;  %v2706_v0 = vld [vmem:[%s3758_s5 + $0x68] sm:$0xff]  ;;  %v2844_v16 = vld [vmem:[%s3760_s8] ss:$0 sm:$0xff] }
 0x355   :  { %v2818_v20 = vpop.permute.xlu2 %2817 }
 0x356   :  { %v2820_v7 = vunpack.i.h.bf16 %v2818_v20  ;;  %v2819_v46 = vunpack.i.l.bf16 %v2818_v20  ;;  %v2710_v20 = vld [vmem:[%s3761_s7 + $0x8] sm:$0xff] }
 0x357   :  { %2103 = vmatpush.bf16.msra.mxu2 %v2710_v20 }
 0x358   :  { %v1808_v47 = vmax.f32 %v1696_v26, %v2820_v7  ;;  %v1807_v38 = vmax.f32 %v1695_v33, %v2819_v46  ;;  %v2708_v26 = vld [vmem:[%s3758_s5 + $0x78] sm:$0xff] }
 0x359   :  { %2052 = vmatpush.bf16.msrb.mxu1 %v2708_v26 }
 0x35b   :  { %2104 = vmatpush.bf16.msra.mxu2 %v2709_v60 }
 0x35d   :  { %v2808_v25 = vpop.permute.xlu1 %2807  ;;  %2053 = vmatpush.bf16.msrb.mxu1 %v2707_v63 }
 0x35e   :  { %v2810_v36 = vunpack.i.h.bf16 %v2808_v25  ;;  %v2809_v61 = vunpack.i.l.bf16 %v2808_v25 }
 0x360   :  { %v1806_v29 = vmax.f32 %v1694_v55, %v2810_v36  ;;  %v1805_v6 = vmax.f32 %v1693_v50, %v2809_v61  ;;  %v2843_v61 = vld [vmem:[%s3759_s6] ss:$0 sm:$0xff] }
 0x361   :  { %2054 = vmatpush.bf16.msrb.mxu1 %v2706_v0 }
 0x362   :  { %v1853_v43 = vmax.f32 %v1806_v29, %v1808_v47  ;;  %v1852_v5 = vmax.f32 %v1805_v6, %v1807_v38 }
 0x364   :  { %v1854_v21 = vpack.c.bf16 %v1853_v43, %v1852_v5 }
 0x365   :  { %v2813_v52 = vpop.permute.xlu1 %2812  ;;  %2055 = vmatpush.bf16.msrb.mxu1 %v2705_v53  ;;  %v2823_v59 = vpop.permute.xlu2 %2822 }
 0x366   :  { %v2815_v18 = vunpack.i.h.bf16 %v2813_v52  ;;  %v2814_v37 = vunpack.i.l.bf16 %v2813_v52  ;;  %2542 = vmatmul.msk.bf16.vlgmr.msra.gmra.mxu1 %vm257_vm1, %v1854_v21  ;;  %v2825_v45 = vunpack.i.h.bf16 %v2823_v59  ;;  %v2824_v8 = vunpack.i.l.bf16 %v2823_v59 }
 0x368   :  { %v1804_v62 = vmax.f32 %v1692_v54, %v2815_v18  ;;  %v1803_v50 = vmax.f32 %v1691_v42, %v2814_v37  ;;  %v1810_v28 = vmax.f32 %v1698_v32, %v2825_v45  ;;  %v1809_v14 = vmax.f32 %v1697_v34, %v2824_v8 }
 0x36a   :  { %v1837_v55 = vmax.f32 %v1801_v1, %v1803_v50  ;;  %v1838_v33 = vmax.f32 %v1802_v51, %v1804_v62 }
 0x36c   :  { %v1839_v3 = vpack.c.bf16 %v1838_v33, %v1837_v55 }
 0x36e   :  { %2559 = vmatmul.msk.bf16.vlgmr.msrb.gmra.mxu2 %vm257_vm1, %v1839_v3 }
 0x38d   :  { %v2828_v54 = vpop.permute.xlu0 %2827 }
 0x38e   :  { %v2830_v42 = vunpack.i.h.bf16 %v2828_v54  ;;  %v2829_v57 = vunpack.i.l.bf16 %v2828_v54 }
 0x390   :  { %v1812_v41 = vmax.f32 %v1700_v49, %v2830_v42  ;;  %v1811_v4 = vmax.f32 %v1699_v39, %v2829_v57 }
 0x392   :  { %v1951_v15 = vmax.f32 %v1810_v28, %v1812_v41  ;;  %v1950_v24 = vmax.f32 %v1809_v14, %v1811_v4 }
 0x394   :  { %v1952_v56 = vpack.c.bf16 %v1951_v15, %v1950_v24 }
 0x395   :  { %v2838_v48 = vpop.permute.xlu2 %2837 }
 0x396   :  { %2584 = vmatmul.msk.bf16.vlgmr.msrb.gmra.mxu3 %vm257_vm1, %v1952_v56  ;;  %v2840_v40 = vunpack.i.h.bf16 %v2838_v48  ;;  %v2839_v58 = vunpack.i.l.bf16 %v2838_v48 }
 0x398   :  { %v1816_v35 = vmax.f32 %v1704_v13, %v2840_v40  ;;  %v1815_v34 = vmax.f32 %v1703_v27, %v2839_v58 }
 0x39d   :  { %v2833_v17 = vpop.permute.xlu1 %2832 }
 0x39e   :  { %v2835_v31 = vunpack.i.h.bf16 %v2833_v17  ;;  %v2834_v32 = vunpack.i.l.bf16 %v2833_v17 }
 0x3a0   :  { %v1814_v44 = vmax.f32 %v1702_v19, %v2835_v31  ;;  %v1813_v39 = vmax.f32 %v1701_v30, %v2834_v32 }
 0x3a2   :  { %v2010_v2 = vmax.f32 %v1814_v44, %v1816_v35  ;;  %v2009_v49 = vmax.f32 %v1813_v39, %v1815_v34 }
 0x3a4   :  { %v2011_v11 = vpack.c.bf16 %v2010_v2, %v2009_v49 }
 0x3a6   :  { %2609 = vmatmul.msk.bf16.vlgmr.msrb.gmra.mxu1 %vm257_vm1, %v2011_v11 }
 0x3e3   :  { %v1900_v27 = vpop.f32.mrf.mxu1 }
 0x3eb   :  { %v1902_v9 = vpop.f32.mrf.mxu1 }
 0x3f1   :  { %v1941_v19 = vpop.f32.mrf.mxu2 }
 0x3f2   :  { %v1942_v23 = vadd.f32 %v1941_v19, %v1900_v27 }
 0x3f9   :  { %v1943_v13 = vpop.f32.mrf.mxu2 }
 0x3fa   :  { %v1944_v25 = vadd.f32 %v1943_v13, %v1902_v9 }
 0x419   :  { %v1998_v22 = vpop.f32.mrf.mxu3 }
 0x41a   :  { %v2003_v7 = vadd.f32 %v1998_v22, %v1942_v23 }
 0x421   :  { %v2000_v46 = vpop.f32.mrf.mxu3 }
 0x422   :  { %v2004_v47 = vadd.f32 %v2000_v46, %v1944_v25 }
 0x423   :  { %v2057_v30 = vpop.f32.mrf.mxu1 }
 0x424   :  { %v2062_v36 = vadd.f32 %v2057_v30, %v2003_v7 }
 0x426   :  { %v2068_v29 = vadd.f32 %v2843_v61, %v2062_v36 }
 0x428   :  { %v2070_v43 = vmax.f32 %v2068_v29, 0.0 }
 0x42b   :  { %v2059_v38 = vpop.f32.mrf.mxu1 }
 0x42c   :  { %v2063_v6 = vadd.f32 %v2059_v38, %v2004_v47 }
 0x42e   :  { %v2069_v12 = vadd.f32 %v2843_v61, %v2063_v6 }
 0x430   :  { %v2071_v5 = vmax.f32 %v2069_v12, 0.0 }
 0x432   :  { %v2072_v10 = vpack.c.bf16 %v2071_v5, %v2070_v43 }
 0x434   :  { %2618 = vmatmul.msk.bf16.vlgmr.msra.gmra.mxu2 %vm2093_vm2, %v2072_v10 }
 0x4b7   :  { %v2106_v21 = vpop.f32.mrf.mxu2 }
 0x4b8   :  { %v2107_v52 = vadd.f32 %v2844_v16, %v2106_v21 }
 0x4ba   :  { %2112 = vst.msk [vmem:[%s3762_s9] sm:$0xff] %vm2111_vm3, %v2107_v52 }
 0x4bf   :  { %v2108_v18 = vpop.f32.mrf.mxu2 }
 0x4c0   :  { %v2109_v37 = vadd.f32 %v2844_v16, %v2108_v18 }
 0x4c2   :  { %2113 = vst.msk [vmem:[%s3762_s9 + $0x8] sm:$0xff] %vm2111_vm3, %v2109_v37 }

</bundles_post_ra>
